<compile_context>
chip_gen: v5e
topology: v5e:2x2
jax: 0.10.0
libtpu: 0.0.40
codegen_flags: <defaults>
</compile_context>

<pallas_src>
import functools

import jax
import jax.numpy as jnp
from jax import lax
from jax.experimental import pallas as pl
from jax.experimental.pallas import tpu as pltpu


def _static_loop(n, body, init, unroll_max=4, unroll=2):
    """Fully unroll tiny static trip counts; lax.fori_loop (unroll=2) otherwise."""
    if n <= unroll_max:
        carry = init
        for i in range(n):
            carry = body(i, carry)
        return carry
    return lax.fori_loop(0, n, body, init, unroll=unroll)


def _upsample_loss_kernel(pred_rows_ref, pred_cols_ref, gt_cols_ref,
                          emd_ref, rep_ref, gn_ref, pn_ref,
                          *, n_true, tq, tk, k, radius, h, eps):
    """One batch sample per grid step: EMD (NN-matching approx) + repulsion partials."""
    n_pad = pred_cols_ref.shape[2]
    num_q = n_pad // tq
    num_k = n_pad // tk
    padded = (n_pad != n_true)

    big = jnp.float32(1e30)
    inv_h2 = jnp.float32(1.0 / (h * h))

    # ---- per-batch key norms, computed once (hoisted out of the query loop) --------
    gt_all = gt_cols_ref[0]                                       # (3, N_pad) lane-dense
    pr_all = pred_cols_ref[0]                                     # (3, N_pad)
    gn = jnp.sum(gt_all * gt_all, axis=0, keepdims=True)          # (1, N_pad)
    pn = jnp.sum(pr_all * pr_all, axis=0, keepdims=True)          # (1, N_pad)
    if padded:
        # Fold the column-padding mask directly into the norms: padded columns become
        # +1e30 so they can never win a min / knn slot, and the per-tile masks vanish.
        lane = lax.broadcasted_iota(jnp.int32, (1, n_pad), 1)
        pad_mask = lane >= n_true
        gn = jnp.where(pad_mask, big, gn)
        pn = jnp.where(pad_mask, big, pn)
    gn_ref[...] = gn
    pn_ref[...] = pn

    def q_body(qi, carry):
        emd_sum, rep_sum = carry
        q0 = qi * tq
        if not isinstance(qi, int):
            q0 = pl.multiple_of(q0, tq)

        pred_q = pred_rows_ref[0, pl.ds(q0, tq), :]                    # (TQ, 3)
        pq_norm = jnp.sum(pred_q * pred_q, axis=1, keepdims=True)      # (TQ, 1)
        row_idx = q0 + lax.broadcasted_iota(jnp.int32, (tq, 1), 0)     # (TQ, 1)
        row_valid = row_idx < n_true

        # ---------------- EMD: running NN min over gt key tiles -----------------
        # TODO(synk): exact auction_match is an iterative bipartite auction solver;
        # nearest-neighbor matching pred -> gt is used as the matching approximation.
        def emd_body(ki, run_min):
            k0 = ki * tk
            if not isinstance(ki, int):
                k0 = pl.multiple_of(k0, tk)
            gt_k = gt_cols_ref[0, :, pl.ds(k0, tk)]                    # (3, TK) lane-dense
            gn_k = gn_ref[:, pl.ds(k0, tk)]                            # (1, TK) cached
            cross = lax.dot_general(pred_q, gt_k, (((1,), (0,)), ((), ())),
                                    preferred_element_type=jnp.float32)  # (TQ, TK) MXU
            part = gn_k - 2.0 * cross          # query norm added after the reduction
            return jnp.minimum(run_min, jnp.min(part, axis=1, keepdims=True))

        run_min = _static_loop(num_k, emd_body, jnp.full((tq, 1), big, jnp.float32))
        min_cost = jnp.maximum(run_min + pq_norm, 0.0)                 # (TQ, 1)
        if padded:
            min_cost = jnp.where(row_valid, min_cost, 0.0)
        emd_sum = emd_sum + jnp.sum(min_cost)

        # ---------------- Repulsion: running k-smallest over pred key tiles ------
        def rep_body(ki, knn_state):
            k0 = ki * tk
            # The self-distance (diagonal) only appears in tiles where the key range
            # overlaps the query range (tq == tk), so skip the mask statically when
            # possible.
            need_diag = True
            if isinstance(qi, int) and isinstance(ki, int):
                need_diag = (qi == ki)
            if not isinstance(ki, int):
                k0 = pl.multiple_of(k0, tk)
            pred_k = pred_cols_ref[0, :, pl.ds(k0, tk)]                # (3, TK)
            pn_k = pn_ref[:, pl.ds(k0, tk)]                            # (1, TK) cached
            cross = lax.dot_general(pred_q, pred_k, (((1,), (0,)), ((), ())),
                                    preferred_element_type=jnp.float32)  # (TQ, TK)
            part = pn_k - 2.0 * cross
            if need_diag:
                col_idx = k0 + lax.broadcasted_iota(jnp.int32, (1, tk), 1)
                part = jnp.where(row_idx == col_idx, big, part)        # exclude self

            # Extract the k smallest of this tile (tie-mask, 1 reduce + 1 pass per
            # neighbor) and insert each into the sorted running state.
            s = list(knn_state)
            for _ in range(k):
                m = jnp.min(part, axis=1, keepdims=True)               # (TQ, 1)
                part = jnp.where(part == m, big, part)
                c = m
                for i in range(k):
                    lo = jnp.minimum(s[i], c)
                    c = jnp.maximum(s[i], c)
                    s[i] = lo
            return tuple(s)

        knn0 = tuple(jnp.full((tq, 1), big, jnp.float32) for _ in range(k))
        knn = _static_loop(num_k, rep_body, knn0)

        rep_q = jnp.zeros((tq, 1), jnp.float32)
        for i in range(k):
            d2 = jnp.maximum(knn[i] + pq_norm, eps)                    # torch: max(d2, eps)
            d = jnp.sqrt(d2)
            w = jnp.exp(-d2 * inv_h2)
            rep_q = rep_q + (radius - d) * w
        if padded:
            rep_q = jnp.where(row_valid, rep_q, 0.0)
        rep_sum = rep_sum + jnp.sum(rep_q)

        return emd_sum, rep_sum

    emd_sum, rep_sum = _static_loop(num_q, q_body,
                                    (jnp.float32(0.0), jnp.float32(0.0)),
                                    unroll_max=2)

    # Per-batch partials; constant divides folded into multiplies, pcd_radius in wrapper.
    emd_val = emd_sum * jnp.float32(1.0 / (n_true * 3.0))   # torch: mean over N*3 residuals
    rep_val = rep_sum * jnp.float32(1.0 / (n_true * k))     # torch: mean over (N, k)
    emd_ref[...] = jnp.full(emd_ref.shape, emd_val, dtype=jnp.float32)
    rep_ref[...] = jnp.full(rep_ref.shape, rep_val, dtype=jnp.float32)


def upsample_loss(pred, gt, pcd_radius, *, alpha=1.0, beta=1.0,
                  nn_size=5, radius=0.07, h=0.03, eps=1e-12):
    """JAX/Pallas implementation of UpsampleLoss.forward.

    Returns (emd_loss * 100, repulsion_loss * alpha, tda_loss * beta).
    """
    B, N, D = pred.shape
    assert D == 3 and gt.shape == pred.shape, "pred/gt must be matching (B, N, 3)"
    assert N >= nn_size, "need at least nn_size points per cloud"
    pred = pred.astype(jnp.float32)
    gt = gt.astype(jnp.float32)
    pcd_radius = pcd_radius.astype(jnp.float32).reshape(B)

    k = nn_size - 1                                  # 4 non-self neighbors
    n_pad128 = ((N + 127) // 128) * 128
    tile = min(512, n_pad128)                        # TQ = TK; fits 32 MiB scoped VMEM
    n_pad = ((N + tile - 1) // tile) * tile

    if n_pad != N:
        padw = ((0, 0), (0, n_pad - N), (0, 0))
        pred_rows = jnp.pad(pred, padw)
        gt_rows = jnp.pad(gt, padw)
    else:
        pred_rows, gt_rows = pred, gt
    pred_cols = jnp.swapaxes(pred_rows, 1, 2)        # (B, 3, N_pad) lane-dense keys
    gt_cols = jnp.swapaxes(gt_rows, 1, 2)            # (B, 3, N_pad)

    kernel = functools.partial(_upsample_loss_kernel, n_true=N, tq=tile, tk=tile,
                               k=k, radius=float(radius), h=float(h), eps=float(eps))

    emd_acc, rep_acc = pl.pallas_call(
        kernel,
        grid=(B,),
        in_specs=[pl.BlockSpec((1, n_pad, 3), lambda b: (b, 0, 0)),
                  pl.BlockSpec((1, 3, n_pad), lambda b: (b, 0, 0)),
                  pl.BlockSpec((1, 3, n_pad), lambda b: (b, 0, 0))],
        out_specs=(pl.BlockSpec((1, 8, 128), lambda b: (b, 0, 0)),
                   pl.BlockSpec((1, 8, 128), lambda b: (b, 0, 0))),
        out_shape=(jax.ShapeDtypeStruct((B, 8, 128), jnp.float32),
                   jax.ShapeDtypeStruct((B, 8, 128), jnp.float32)),
        scratch_shapes=[pltpu.VMEM((1, n_pad), jnp.float32),   # gt key norms cache
                        pltpu.VMEM((1, n_pad), jnp.float32)],  # pred key norms cache
        compiler_params=pltpu.CompilerParams(
            dimension_semantics=("parallel",)),      # batch shards across TCs on v7x
    )(pred_rows, pred_cols, gt_cols)

    emd_per_b = emd_acc[:, 0, 0]                     # (B,)
    rep_per_b = rep_acc[:, 0, 0]                     # (B,)
    emd_loss = jnp.mean(emd_per_b / pcd_radius)      # torch: /pcd_radius then batch mean
    repulsion_loss = jnp.mean(rep_per_b)             # global mean over (B, N, k)

    # TODO(synk): Vietoris-Rips persistent homology + Wasserstein distance (TDA loss)
    # has no Pallas equivalent (union-find over a sorted edge filtration); returned as 0.
    tda_loss = jnp.float32(0.0)

    return emd_loss * 100.0, repulsion_loss * alpha, tda_loss * beta


if __name__ == "__main__":
    key = jax.random.PRNGKey(0)
    kp, kg, kr = jax.random.split(key, 3)
    B, N = 2, 64
    pred = jax.random.normal(kp, (B, N, 3), dtype=jnp.float32)
    gt = jax.random.normal(kg, (B, N, 3), dtype=jnp.float32)
    pcd_radius = jax.random.uniform(kr, (B,), dtype=jnp.float32,
                                    minval=0.8, maxval=1.2)

    emd, rep, tda = upsample_loss(pred, gt, pcd_radius)
    jax.block_until_ready((emd, rep, tda))
    print("KERNEL_OK")
</pallas_src>

<mosaic_0001>
module attributes {stable_mosaic.version = 11 : i64} {
  func.func @_upsample_loss_kernel(%arg0: i32, %arg1: memref<1x128x3xf32, #tpu.memory_space<vmem>>, %arg2: memref<1x3x128xf32, #tpu.memory_space<vmem>>, %arg3: memref<1x3x128xf32, #tpu.memory_space<vmem>>, %arg4: memref<1x8x128xf32, #tpu.memory_space<vmem>>, %arg5: memref<1x8x128xf32, #tpu.memory_space<vmem>>, %arg6: memref<1x128xf32, #tpu.memory_space<vmem>>, %arg7: memref<1x128xf32, #tpu.memory_space<vmem>>) attributes {dimension_semantics = [#tpu.dimension_semantics<parallel>], iteration_bounds = array<i64: 2>, scalar_prefetch = 0 : i64, scratch_operands = 2 : i64, tpu.core_type = #tpu.core_type<tc>, window_params = [{transform_indices = @transform_0, window_bounds = array<i64: 1, 128, 3>}, {transform_indices = @transform_1, window_bounds = array<i64: 1, 3, 128>}, {transform_indices = @transform_2, window_bounds = array<i64: 1, 3, 128>}, {transform_indices = @transform_3, window_bounds = array<i64: 1, 8, 128>}, {transform_indices = @transform_4, window_bounds = array<i64: 1, 8, 128>}]} {
    %c0 = arith.constant 0 : index
    %c0_0 = arith.constant 0 : index
    %c0_1 = arith.constant 0 : index
    %0 = vector.load %arg3[%c0, %c0_0, %c0_1] : memref<1x3x128xf32, #tpu.memory_space<vmem>>, vector<1x3x128xf32>
    %1 = vector.shape_cast %0 : vector<1x3x128xf32> to vector<3x128xf32>
    %c0_2 = arith.constant 0 : index
    %c0_3 = arith.constant 0 : index
    %c0_4 = arith.constant 0 : index
    %2 = vector.load %arg2[%c0_2, %c0_3, %c0_4] : memref<1x3x128xf32, #tpu.memory_space<vmem>>, vector<1x3x128xf32>
    %3 = vector.shape_cast %2 : vector<1x3x128xf32> to vector<3x128xf32>
    %4 = arith.mulf %1, %1 : vector<3x128xf32>
    %cst = arith.constant dense<0.000000e+00> : vector<128xf32>
    %5 = vector.multi_reduction <add>, %4, %cst [0] : vector<3x128xf32> to vector<128xf32>
    %6 = vector.shape_cast %5 : vector<128xf32> to vector<1x128xf32>
    %7 = arith.mulf %3, %3 : vector<3x128xf32>
    %cst_5 = arith.constant dense<0.000000e+00> : vector<128xf32>
    %8 = vector.multi_reduction <add>, %7, %cst_5 [0] : vector<3x128xf32> to vector<128xf32>
    %9 = vector.shape_cast %8 : vector<128xf32> to vector<1x128xf32>
    %10 = tpu.iota {dimensions = array<i32: 1>} : vector<1x128xi32>
    %c64_i32 = arith.constant 64 : i32
    %11 = vector.broadcast %c64_i32 : i32 to vector<1x128xi32>
    %12 = arith.cmpi sge, %10, %11 : vector<1x128xi32>
    %cst_6 = arith.constant 1.000000e+30 : f32
    %13 = vector.broadcast %cst_6 : f32 to vector<1x128xf32>
    %14 = arith.select %12, %13, %6 : vector<1x128xi1>, vector<1x128xf32>
    %cst_7 = arith.constant 1.000000e+30 : f32
    %15 = vector.broadcast %cst_7 : f32 to vector<1x128xf32>
    %16 = arith.select %12, %15, %9 : vector<1x128xi1>, vector<1x128xf32>
    %c0_8 = arith.constant 0 : index
    %c0_9 = arith.constant 0 : index
    %17 = vector.load %arg6[%c0_8, %c0_9] : memref<1x128xf32, #tpu.memory_space<vmem>>, vector<1x128xf32>
    tpu.vector_store %arg6[%c0_8, %c0_9], %14 {strides = array<i32>} : memref<1x128xf32, #tpu.memory_space<vmem>>, vector<1x128xf32>,
    %c0_10 = arith.constant 0 : index
    %c0_11 = arith.constant 0 : index
    %18 = vector.load %arg7[%c0_10, %c0_11] : memref<1x128xf32, #tpu.memory_space<vmem>>, vector<1x128xf32>
    tpu.vector_store %arg7[%c0_10, %c0_11], %16 {strides = array<i32>} : memref<1x128xf32, #tpu.memory_space<vmem>>, vector<1x128xf32>,
    %c0_12 = arith.constant 0 : index
    %c0_13 = arith.constant 0 : index
    %c0_14 = arith.constant 0 : index
    %19 = vector.load %arg1[%c0_12, %c0_13, %c0_14] : memref<1x128x3xf32, #tpu.memory_space<vmem>>, vector<1x128x3xf32>
    %20 = vector.shape_cast %19 : vector<1x128x3xf32> to vector<128x3xf32>
    %21 = arith.mulf %20, %20 : vector<128x3xf32>
    %cst_15 = arith.constant dense<0.000000e+00> : vector<128xf32>
    %22 = vector.multi_reduction <add>, %21, %cst_15 [1] : vector<128x3xf32> to vector<128xf32>
    %23 = vector.shape_cast %22 : vector<128xf32> to vector<128x1xf32>
    %24 = tpu.iota {dimensions = array<i32: 0>} : vector<128x1xi32>
    %c0_i32 = arith.constant 0 : i32
    %25 = vector.broadcast %c0_i32 : i32 to vector<128x1xi32>
    %26 = arith.addi %25, %24 : vector<128x1xi32>
    %c64_i32_16 = arith.constant 64 : i32
    %27 = vector.broadcast %c64_i32_16 : i32 to vector<128x1xi32>
    %28 = arith.cmpi slt, %26, %27 : vector<128x1xi32>
    %cst_17 = arith.constant 1.000000e+30 : f32
    %29 = vector.broadcast %cst_17 : f32 to vector<128x1xf32>
    %c0_18 = arith.constant 0 : index
    %c0_19 = arith.constant 0 : index
    %c0_20 = arith.constant 0 : index
    %30 = vector.load %arg3[%c0_18, %c0_19, %c0_20] : memref<1x3x128xf32, #tpu.memory_space<vmem>>, vector<1x3x128xf32>
    %31 = vector.shape_cast %30 : vector<1x3x128xf32> to vector<3x128xf32>
    %c0_21 = arith.constant 0 : index
    %c0_22 = arith.constant 0 : index
    %32 = vector.load %arg6[%c0_21, %c0_22] : memref<1x128xf32, #tpu.memory_space<vmem>>, vector<1x128xf32>
    %cst_23 = arith.constant dense<0.000000e+00> : vector<128x128xf32>
    %33 = tpu.matmul %20, %31, %cst_23 {dimension_numbers = #tpu.dot_dimension_numbers<[1], [0], [0], [1], [0, 0, 1, 1], [], []>} : vector<128x3xf32>, vector<3x128xf32>, vector<128x128xf32> -> vector<128x128xf32>
    %cst_24 = arith.constant 2.000000e+00 : f32
    %34 = vector.broadcast %cst_24 : f32 to vector<128x128xf32>
    %35 = arith.mulf %34, %33 : vector<128x128xf32>
    %36 = vector.broadcast %32 : vector<1x128xf32> to vector<128x128xf32>
    %37 = arith.subf %36, %35 : vector<128x128xf32>
    %cst_25 = arith.constant dense<0x7F800000> : vector<128xf32>
    %38 = vector.multi_reduction <minimumf>, %37, %cst_25 [1] : vector<128x128xf32> to vector<128xf32>
    %39 = vector.shape_cast %38 : vector<128xf32> to vector<128x1xf32>
    %40 = arith.minimumf %29, %39 : vector<128x1xf32>
    %41 = arith.addf %40, %23 : vector<128x1xf32>
    %cst_26 = arith.constant 0.000000e+00 : f32
    %42 = vector.broadcast %cst_26 : f32 to vector<128x1xf32>
    %43 = arith.maximumf %41, %42 : vector<128x1xf32>
    %cst_27 = arith.constant 0.000000e+00 : f32
    %44 = vector.broadcast %cst_27 : f32 to vector<128x1xf32>
    %45 = arith.select %28, %43, %44 : vector<128x1xi1>, vector<128x1xf32>
    %46 = vector.shape_cast %45 : vector<128x1xf32> to vector<1x128x1xf32>
    %cst_28 = arith.constant dense<0.000000e+00> : vector<1xf32>
    %47 = vector.multi_reduction <add>, %46, %cst_28 [1, 2] : vector<1x128x1xf32> to vector<1xf32>
    %48 = vector.shape_cast %47 : vector<1xf32> to vector<1x1x1xf32>
    %49 = vector.extract %48[0, 0, 0] : f32 from vector<1x1x1xf32>
    %cst_29 = arith.constant 0.000000e+00 : f32
    %50 = arith.addf %cst_29, %49 : f32
    %cst_30 = arith.constant 1.000000e+30 : f32
    %51 = vector.broadcast %cst_30 : f32 to vector<128x1xf32>
    %cst_31 = arith.constant 1.000000e+30 : f32
    %52 = vector.broadcast %cst_31 : f32 to vector<128x1xf32>
    %cst_32 = arith.constant 1.000000e+30 : f32
    %53 = vector.broadcast %cst_32 : f32 to vector<128x1xf32>
    %cst_33 = arith.constant 1.000000e+30 : f32
    %54 = vector.broadcast %cst_33 : f32 to vector<128x1xf32>
    %c0_34 = arith.constant 0 : index
    %c0_35 = arith.constant 0 : index
    %c0_36 = arith.constant 0 : index
    %55 = vector.load %arg2[%c0_34, %c0_35, %c0_36] : memref<1x3x128xf32, #tpu.memory_space<vmem>>, vector<1x3x128xf32>
    %56 = vector.shape_cast %55 : vector<1x3x128xf32> to vector<3x128xf32>
    %c0_37 = arith.constant 0 : index
    %c0_38 = arith.constant 0 : index
    %57 = vector.load %arg7[%c0_37, %c0_38] : memref<1x128xf32, #tpu.memory_space<vmem>>, vector<1x128xf32>
    %cst_39 = arith.constant dense<0.000000e+00> : vector<128x128xf32>
    %58 = tpu.matmul %20, %56, %cst_39 {dimension_numbers = #tpu.dot_dimension_numbers<[1], [0], [0], [1], [0, 0, 1, 1], [], []>} : vector<128x3xf32>, vector<3x128xf32>, vector<128x128xf32> -> vector<128x128xf32>
    %cst_40 = arith.constant 2.000000e+00 : f32
    %59 = vector.broadcast %cst_40 : f32 to vector<128x128xf32>
    %60 = arith.mulf %59, %58 : vector<128x128xf32>
    %61 = vector.broadcast %57 : vector<1x128xf32> to vector<128x128xf32>
    %62 = arith.subf %61, %60 : vector<128x128xf32>
    %63 = tpu.iota {dimensions = array<i32: 1>} : vector<1x128xi32>
    %c0_i32_41 = arith.constant 0 : i32
    %64 = vector.broadcast %c0_i32_41 : i32 to vector<1x128xi32>
    %65 = arith.addi %64, %63 : vector<1x128xi32>
    %66 = vector.broadcast %26 : vector<128x1xi32> to vector<128x128xi32>
    %67 = vector.broadcast %65 : vector<1x128xi32> to vector<128x128xi32>
    %68 = arith.cmpi eq, %66, %67 : vector<128x128xi32>
    %cst_42 = arith.constant 1.000000e+30 : f32
    %69 = vector.broadcast %cst_42 : f32 to vector<128x128xf32>
    %70 = arith.select %68, %69, %62 : vector<128x128xi1>, vector<128x128xf32>
    %cst_43 = arith.constant dense<0x7F800000> : vector<128xf32>
    %71 = vector.multi_reduction <minimumf>, %70, %cst_43 [1] : vector<128x128xf32> to vector<128xf32>
    %72 = vector.shape_cast %71 : vector<128xf32> to vector<128x1xf32>
    %73 = vector.broadcast %72 : vector<128x1xf32> to vector<128x128xf32>
    %74 = arith.cmpf oeq, %70, %73 : vector<128x128xf32>
    %cst_44 = arith.constant 1.000000e+30 : f32
    %75 = vector.broadcast %cst_44 : f32 to vector<128x128xf32>
    %76 = arith.select %74, %75, %70 : vector<128x128xi1>, vector<128x128xf32>
    %77 = arith.minimumf %51, %72 : vector<128x1xf32>
    %78 = arith.maximumf %51, %72 : vector<128x1xf32>
    %79 = arith.minimumf %52, %78 : vector<128x1xf32>
    %80 = arith.maximumf %52, %78 : vector<128x1xf32>
    %81 = arith.minimumf %53, %80 : vector<128x1xf32>
    %82 = arith.maximumf %53, %80 : vector<128x1xf32>
    %83 = arith.minimumf %54, %82 : vector<128x1xf32>
    %cst_45 = arith.constant dense<0x7F800000> : vector<128xf32>
    %84 = vector.multi_reduction <minimumf>, %76, %cst_45 [1] : vector<128x128xf32> to vector<128xf32>
    %85 = vector.shape_cast %84 : vector<128xf32> to vector<128x1xf32>
    %86 = vector.broadcast %85 : vector<128x1xf32> to vector<128x128xf32>
    %87 = arith.cmpf oeq, %76, %86 : vector<128x128xf32>
    %cst_46 = arith.constant 1.000000e+30 : f32
    %88 = vector.broadcast %cst_46 : f32 to vector<128x128xf32>
    %89 = arith.select %87, %88, %76 : vector<128x128xi1>, vector<128x128xf32>
    %90 = arith.minimumf %77, %85 : vector<128x1xf32>
    %91 = arith.maximumf %77, %85 : vector<128x1xf32>
    %92 = arith.minimumf %79, %91 : vector<128x1xf32>
    %93 = arith.maximumf %79, %91 : vector<128x1xf32>
    %94 = arith.minimumf %81, %93 : vector<128x1xf32>
    %95 = arith.maximumf %81, %93 : vector<128x1xf32>
    %96 = arith.minimumf %83, %95 : vector<128x1xf32>
    %cst_47 = arith.constant dense<0x7F800000> : vector<128xf32>
    %97 = vector.multi_reduction <minimumf>, %89, %cst_47 [1] : vector<128x128xf32> to vector<128xf32>
    %98 = vector.shape_cast %97 : vector<128xf32> to vector<128x1xf32>
    %99 = vector.broadcast %98 : vector<128x1xf32> to vector<128x128xf32>
    %100 = arith.cmpf oeq, %89, %99 : vector<128x128xf32>
    %cst_48 = arith.constant 1.000000e+30 : f32
    %101 = vector.broadcast %cst_48 : f32 to vector<128x128xf32>
    %102 = arith.select %100, %101, %89 : vector<128x128xi1>, vector<128x128xf32>
    %103 = arith.minimumf %90, %98 : vector<128x1xf32>
    %104 = arith.maximumf %90, %98 : vector<128x1xf32>
    %105 = arith.minimumf %92, %104 : vector<128x1xf32>
    %106 = arith.maximumf %92, %104 : vector<128x1xf32>
    %107 = arith.minimumf %94, %106 : vector<128x1xf32>
    %108 = arith.maximumf %94, %106 : vector<128x1xf32>
    %109 = arith.minimumf %96, %108 : vector<128x1xf32>
    %cst_49 = arith.constant dense<0x7F800000> : vector<128xf32>
    %110 = vector.multi_reduction <minimumf>, %102, %cst_49 [1] : vector<128x128xf32> to vector<128xf32>
    %111 = vector.shape_cast %110 : vector<128xf32> to vector<128x1xf32>
    %112 = arith.minimumf %103, %111 : vector<128x1xf32>
    %113 = arith.maximumf %103, %111 : vector<128x1xf32>
    %114 = arith.minimumf %105, %113 : vector<128x1xf32>
    %115 = arith.maximumf %105, %113 : vector<128x1xf32>
    %116 = arith.minimumf %107, %115 : vector<128x1xf32>
    %117 = arith.maximumf %107, %115 : vector<128x1xf32>
    %118 = arith.minimumf %109, %117 : vector<128x1xf32>
    %cst_50 = arith.constant 0.000000e+00 : f32
    %119 = vector.broadcast %cst_50 : f32 to vector<128x1xf32>
    %120 = arith.addf %112, %23 : vector<128x1xf32>
    %cst_51 = arith.constant 9.99999996E-13 : f32
    %121 = vector.broadcast %cst_51 : f32 to vector<128x1xf32>
    %122 = arith.maximumf %120, %121 : vector<128x1xf32>
    %123 = math.sqrt %122 : vector<128x1xf32>
    %cst_52 = arith.constant 0.000000e+00 : f32
    %124 = vector.broadcast %cst_52 : f32 to vector<128x1xf32>
    %125 = arith.subf %124, %122 : vector<128x1xf32>
    %cst_53 = arith.constant 1111.11108 : f32
    %126 = vector.broadcast %cst_53 : f32 to vector<128x1xf32>
    %127 = arith.mulf %125, %126 : vector<128x1xf32>
    %128 = math.exp %127 : vector<128x1xf32>
    %cst_54 = arith.constant 7.000000e-02 : f32
    %129 = vector.broadcast %cst_54 : f32 to vector<128x1xf32>
    %130 = arith.subf %129, %123 : vector<128x1xf32>
    %131 = arith.mulf %130, %128 : vector<128x1xf32>
    %132 = arith.addf %119, %131 : vector<128x1xf32>
    %133 = arith.addf %114, %23 : vector<128x1xf32>
    %cst_55 = arith.constant 9.99999996E-13 : f32
    %134 = vector.broadcast %cst_55 : f32 to vector<128x1xf32>
    %135 = arith.maximumf %133, %134 : vector<128x1xf32>
    %136 = math.sqrt %135 : vector<128x1xf32>
    %cst_56 = arith.constant 0.000000e+00 : f32
    %137 = vector.broadcast %cst_56 : f32 to vector<128x1xf32>
    %138 = arith.subf %137, %135 : vector<128x1xf32>
    %cst_57 = arith.constant 1111.11108 : f32
    %139 = vector.broadcast %cst_57 : f32 to vector<128x1xf32>
    %140 = arith.mulf %138, %139 : vector<128x1xf32>
    %141 = math.exp %140 : vector<128x1xf32>
    %cst_58 = arith.constant 7.000000e-02 : f32
    %142 = vector.broadcast %cst_58 : f32 to vector<128x1xf32>
    %143 = arith.subf %142, %136 : vector<128x1xf32>
    %144 = arith.mulf %143, %141 : vector<128x1xf32>
    %145 = arith.addf %132, %144 : vector<128x1xf32>
    %146 = arith.addf %116, %23 : vector<128x1xf32>
    %cst_59 = arith.constant 9.99999996E-13 : f32
    %147 = vector.broadcast %cst_59 : f32 to vector<128x1xf32>
    %148 = arith.maximumf %146, %147 : vector<128x1xf32>
    %149 = math.sqrt %148 : vector<128x1xf32>
    %cst_60 = arith.constant 0.000000e+00 : f32
    %150 = vector.broadcast %cst_60 : f32 to vector<128x1xf32>
    %151 = arith.subf %150, %148 : vector<128x1xf32>
    %cst_61 = arith.constant 1111.11108 : f32
    %152 = vector.broadcast %cst_61 : f32 to vector<128x1xf32>
    %153 = arith.mulf %151, %152 : vector<128x1xf32>
    %154 = math.exp %153 : vector<128x1xf32>
    %cst_62 = arith.constant 7.000000e-02 : f32
    %155 = vector.broadcast %cst_62 : f32 to vector<128x1xf32>
    %156 = arith.subf %155, %149 : vector<128x1xf32>
    %157 = arith.mulf %156, %154 : vector<128x1xf32>
    %158 = arith.addf %145, %157 : vector<128x1xf32>
    %159 = arith.addf %118, %23 : vector<128x1xf32>
    %cst_63 = arith.constant 9.99999996E-13 : f32
    %160 = vector.broadcast %cst_63 : f32 to vector<128x1xf32>
    %161 = arith.maximumf %159, %160 : vector<128x1xf32>
    %162 = math.sqrt %161 : vector<128x1xf32>
    %cst_64 = arith.constant 0.000000e+00 : f32
    %163 = vector.broadcast %cst_64 : f32 to vector<128x1xf32>
    %164 = arith.subf %163, %161 : vector<128x1xf32>
    %cst_65 = arith.constant 1111.11108 : f32
    %165 = vector.broadcast %cst_65 : f32 to vector<128x1xf32>
    %166 = arith.mulf %164, %165 : vector<128x1xf32>
    %167 = math.exp %166 : vector<128x1xf32>
    %cst_66 = arith.constant 7.000000e-02 : f32
    %168 = vector.broadcast %cst_66 : f32 to vector<128x1xf32>
    %169 = arith.subf %168, %162 : vector<128x1xf32>
    %170 = arith.mulf %169, %167 : vector<128x1xf32>
    %171 = arith.addf %158, %170 : vector<128x1xf32>
    %cst_67 = arith.constant 0.000000e+00 : f32
    %172 = vector.broadcast %cst_67 : f32 to vector<128x1xf32>
    %173 = arith.select %28, %171, %172 : vector<128x1xi1>, vector<128x1xf32>
    %174 = vector.shape_cast %173 : vector<128x1xf32> to vector<1x128x1xf32>
    %cst_68 = arith.constant dense<0.000000e+00> : vector<1xf32>
    %175 = vector.multi_reduction <add>, %174, %cst_68 [1, 2] : vector<1x128x1xf32> to vector<1xf32>
    %176 = vector.shape_cast %175 : vector<1xf32> to vector<1x1x1xf32>
    %177 = vector.extract %176[0, 0, 0] : f32 from vector<1x1x1xf32>
    %cst_69 = arith.constant 0.000000e+00 : f32
    %178 = arith.addf %cst_69, %177 : f32
    %cst_70 = arith.constant 0.00520833349 : f32
    %179 = arith.mulf %50, %cst_70 : f32
    %cst_71 = arith.constant 3.906250e-03 : f32
    %180 = arith.mulf %178, %cst_71 : f32
    %181 = vector.broadcast %179 : f32 to vector<1x8x128xf32>
    %c0_72 = arith.constant 0 : index
    %c0_73 = arith.constant 0 : index
    %c0_74 = arith.constant 0 : index
    %182 = vector.load %arg4[%c0_72, %c0_73, %c0_74] : memref<1x8x128xf32, #tpu.memory_space<vmem>>, vector<1x8x128xf32>
    tpu.vector_store %arg4[%c0_72, %c0_73, %c0_74], %181 {strides = array<i32>} : memref<1x8x128xf32, #tpu.memory_space<vmem>>, vector<1x8x128xf32>,
    %183 = vector.broadcast %180 : f32 to vector<1x8x128xf32>
    %c0_75 = arith.constant 0 : index
    %c0_76 = arith.constant 0 : index
    %c0_77 = arith.constant 0 : index
    %184 = vector.load %arg5[%c0_75, %c0_76, %c0_77] : memref<1x8x128xf32, #tpu.memory_space<vmem>>, vector<1x8x128xf32>
    tpu.vector_store %arg5[%c0_75, %c0_76, %c0_77], %183 {strides = array<i32>} : memref<1x8x128xf32, #tpu.memory_space<vmem>>, vector<1x8x128xf32>,
    return
  }
  func.func @transform_0(%arg0: i32) -> (i32, i32, i32) {
    %c0_i32 = arith.constant 0 : i32
    %c0_i32_0 = arith.constant 0 : i32
    %c0_i32_1 = arith.constant 0 : i32
    return %arg0, %c0_i32, %c0_i32_0 : i32, i32, i32
  }
  func.func @transform_1(%arg0: i32) -> (i32, i32, i32) {
    %c0_i32 = arith.constant 0 : i32
    %c0_i32_0 = arith.constant 0 : i32
    %c0_i32_1 = arith.constant 0 : i32
    return %arg0, %c0_i32, %c0_i32_0 : i32, i32, i32
  }
  func.func @transform_2(%arg0: i32) -> (i32, i32, i32) {
    %c0_i32 = arith.constant 0 : i32
    %c0_i32_0 = arith.constant 0 : i32
    %c0_i32_1 = arith.constant 0 : i32
    return %arg0, %c0_i32, %c0_i32_0 : i32, i32, i32
  }
  func.func @transform_3(%arg0: i32) -> (i32, i32, i32) {
    %c0_i32 = arith.constant 0 : i32
    %c0_i32_0 = arith.constant 0 : i32
    %c0_i32_1 = arith.constant 0 : i32
    return %arg0, %c0_i32, %c0_i32_0 : i32, i32, i32
  }
  func.func @transform_4(%arg0: i32) -> (i32, i32, i32) {
    %c0_i32 = arith.constant 0 : i32
    %c0_i32_0 = arith.constant 0 : i32
    %c0_i32_1 = arith.constant 0 : i32
    return %arg0, %c0_i32, %c0_i32_0 : i32, i32, i32
  }
}

</mosaic_0001>

<bundles_post_ra>
// kernel: tpu_custom_call.1
= control target key start
LH: loop header
LB: loop body
LE: loop exit
PB: predicated region body
PF: predicated region fallthrough
CT: control target
= control target key end

     0   :  { %10 = vsyncpa [#allocation5], 0  ;;  %s4879_s0 = inlined_call_operand.vmem [shape: f32[2,128,3], index: 0, kind: input, shape index: {}]   ;;  %s4880_s1 = inlined_call_operand.vmem [shape: f32[2,3,128], index: 1, kind: input, shape index: {}]   ;;  %s4881_s2 = inlined_call_operand.vmem [shape: f32[2,3,128], index: 2, kind: input, shape index: {}]   ;;  %s4882_s3 = inlined_call_operand.hbm [shape: f32[2,8,128], index: 3, kind: output, shape index: {0}]   ;;  %s4883_s4 = inlined_call_operand.hbm [shape: f32[2,8,128], index: 4, kind: output, shape index: {1}]  }
   0x1   :  { %12 = vsyncpa [#allocation5 + $0x1], 0 }
   0x2   :  { %13 = vsyncpa [#allocation7], 0 }
   0x3   :  { %15 = vsyncpa [#allocation7 + $0x1], 0  ;;  %s3391_s15 = smov 0   ;;  %s3393_s16 = smov 0  }
   0x4   :  { %s3395_s17 = smov 0   ;;  %s3397_s18 = smov 0  }
   0x5 LB: > { %s3412_s19 = sadd.s32 4294967295, %s3364_s18   ;;  %s3039_s20 = sadd.s32 4294967294, %s3364_s18   ;;  %s3364_s18 = sphi %s3397_s18, %s4958_s18   ;;  %s3360_s17 = sphi %s3395_s17, %s4957_s17   ;;  %s3356_s16 = sphi %s3393_s16, %s4956_s16   ;;  %s3352_s15 = sphi %s3391_s15, %s4955_s15  }
   0x6   : > { %s3416_s21 = sadd.s32 1, %s3364_s18   ;;  %s106_s22 = sadd.s32 1, %s3360_s17 }
   0x7   : > { %s103_s23 = ssub.s32 %s3364_s18, %s3416_s21  ;;  %p116_p0 = scmp.ne.s32.totalorder %s3360_s17, %s3356_s16 }
   0x8   : > { %p104_p1 = scmp.eq.s32.totalorder %s103_s23, 0  ;;  %p117_p2 = scmp.eq.s32.totalorder %s3412_s19, 1 }
   0x9   : > { %p122_p3 = scmp.ne.s32.totalorder %s3356_s16, %s3352_s15  ;;  %p123_p4 = scmp.eq.s32.totalorder %s3039_s20, 1 }
   0xa   : > { %s3427_s24 = scalar_select %p104_p1, %s3360_s17, %s106_s22  }
   0xb   : > { %p3429_p5 = por %p117_p2, %p116_p0  ;;  %p3433_p6 = por %p123_p4, %p122_p3 }
   0xc   : > { %p3042_p7 = scmp.ge.s32.totalorder %s3364_s18, 1  ;;  %p189_p8 = scmp.lt.s32.totalorder %s3364_s18, 3 }
   0xe   : > { %p190_p9 = pnand %p3042_p7, %p189_p8 }
  0x10   : > { %193 = sbr.rel (%p190_p9) target bundleno = 1031 (0x407), region = 32 }
  0x15   : > { %p228_p10 = scmp.lt.s32.totalorder %s3412_s19, 1  ;;  %vm244_vm0 = vcmask 1042432   ;;  %vm299_vm1 = vcmask 23552   ;;  %v260_v6 = vlaneseq  ;;  %s4822_s13 = sand.u32 1, %s3356_s16  }
  0x16   : > { %s3085_s14 = sshll.u32 %s3412_s19, 3  ;;  %s3043_s20 = sshll.u32 %s4822_s13, 3 }
  0x17   : > { %s3441_s27 = scalar_select %p228_p10, %s3412_s19, 1  ;;  %v3466_v10 = vand.u32 127, %v260_v6  ;;  %v349_v21 = vshrl.u32 %v260_v6, 7 }
  0x18   : > { %s2889_s7 = scalar_lea.sflag [#allocation5], %s4822_s13 }
  0x19   : > { %s3089_s28 = sshll.u32 %s3441_s27, 7  ;;  %s3047_s29 = sshll.u32 %s3441_s27, 2  ;;  %vm262_vm2 = vcmp.ge.s32.totalorder %v3466_v10, 64  ;;  %vm777_vm3 = vcmp.eq.s32.totalorder %v349_v21, %v3466_v10  ;;  %v350_v27 = vadd.s32 8, %v349_v21  ;;  %v351_v32 = vadd.s32 16, %v349_v21 }
  0x1a   : > { %s3448_s6 = scalar_lea.vmem %s4879_s0, %s3089_s28  ;;  %s236_s9 = scalar_lea.vmem %s4880_s1, %s3047_s29  ;;  %v352_v37 = vadd.s32 24, %v349_v21  ;;  %v353_v42 = vadd.s32 32, %v349_v21  ;;  %v354_v47 = vadd.s32 40, %v349_v21  ;;  %v355_v52 = vadd.s32 48, %v349_v21 }
  0x1b   : > { %v242_v0 = vld [vmem:[%s236_s9] sm:$0x7]  ;;  %v3464_v8 = vld [vmem:[%s3448_s6 + $0x8] sm:$0xff]  ;;  %v3472_v14 = vld [vmem:[%s3448_s6 + $0x10] sm:$0xff]  ;;  %vm778_vm4 = vcmp.eq.s32.totalorder %v350_v27, %v3466_v10  ;;  %vm779_vm5 = vcmp.eq.s32.totalorder %v351_v32, %v3466_v10  ;;  %v356_v57 = vadd.s32 56, %v349_v21  ;;  %s240_s12 = scalar_lea.vmem %s4881_s2, %s3047_s29  ;;  %s2904_s27 = scalar_lea.hbm %s4882_s3, %s3085_s14 }
  0x1c   : > { %v672_v1 = vld [vmem:[%s236_s9] sm:$0x7]  ;;  %v252_v3 = vmul.f32 %v242_v0, %v242_v0  ;;  %v3479_v16 = vld [vmem:[%s3448_s6 + $0x18] sm:$0xff]  ;;  %v3489_v18 = vld [vmem:[%s3448_s6 + $0x28] sm:$0xff]  ;;  %vm780_vm6 = vcmp.eq.s32.totalorder %v352_v37, %v3466_v10  ;;  %vm781_vm7 = vcmp.eq.s32.totalorder %v353_v42, %v3466_v10  ;;  %vm782_vm8 = vcmp.eq.s32.totalorder %v354_v47, %v3466_v10  ;;  %s220_s28 = scalar_lea.vmem [#allocation4], %s3043_s20  ;;  %s2908_s30 = sshll.u32 %s2904_s27, 4  ;;  %s2909_s30 = int_to_ptr.hbm [resolvable:$true] %s2908_s30 }
  0x1d   : > { %v3456_v2 = vld [vmem:[%s3448_s6] sm:$0xff]  ;;  %3066 = vmatpush.msk.msra.mxu1 %vm244_vm0, %v672_v1  ;;  %3091 = vmatpush.msk.msra.mxu3 %vm244_vm0, %v672_v1  ;;  %v3494_v19 = vld [vmem:[%s3448_s6 + $0x30] sm:$0xff]  ;;  %v3499_v20 = vld [vmem:[%s3448_s6 + $0x38] sm:$0xff]  ;;  %vm783_vm9 = vcmp.eq.s32.totalorder %v355_v52, %v3466_v10  ;;  %vm784_vm10 = vcmp.eq.s32.totalorder %v356_v57, %v3466_v10  ;;  %s2906_s29 = sshll.u32 %s220_s28, 4  ;;  %s3284_s8 = sshra.s32 %s2909_s30, 4  ;;  %s2907_s29 = int_to_ptr.vmem [resolvable:$true] %s2906_s29  ;;  %s3285_s8 = int_to_ptr.hbm [resolvable:$true] %s3284_s8 }
  0x1e   : > { %3067 = vmatmul.msk.f32.vlgmr.msra.gmra.mxu1 %vm299_vm1, %v3456_v2  ;;  %v253_v4 = vsel %vm244_vm0, %v252_v3, 0.0  ;;  %v3484_v17 = vld [vmem:[%s3448_s6 + $0x20] sm:$0xff]  ;;  %s3286_s9 = scalar_lea.hbm %s3285_s8, 8  ;;  %p3291_p0 = scmp.lt.s32.totalorder %s3285_s8, %s4882_s3 }
  0x1f   : > { %v254_v5 = vrot.slane %v253_v4, 4  ;;  %p3287_p11 = scmp.ne.s32.totalorder %s3285_s8, %s3286_s9 }
  0x21   : > { %v255_v7 = vadd.f32 %v254_v5, %v253_v4  ;;  %p3288_p12 = pnand %p3287_p11, %p3429_p5 }
  0x23   : > { %v256_v9 = vrot.slane %v255_v7, 2  ;;  %p3289_p13 = pneg %p3288_p12 }
  0x25   : > { %v257_v11 = vadd.f32 %v256_v9, %v255_v7 }
  0x26   : > { %3068 = vmatmul.msk.f32.gmra.mxu1 %vm299_vm1, %v3464_v8 }
  0x27   : > { %v258_v12 = vrot.slane %v257_v11, 1 }
  0x29   : > { %v259_v13 = vadd.f32 %v258_v12, %v257_v11 }
  0x2b   : > { %v264_v15 = vsel %vm262_vm2, 1e+30, %v259_v13 }
  0x2c   : > { %266 = vst [vmem:[#allocation3] sm:$0x1] %v264_v15 }
  0x2e   : > { %3069 = vmatmul.msk.f32.gmra.mxu1 %vm299_vm1, %v3472_v14 }
  0x33   : > { %v3140_v22 = vld [vmem:[#allocation3] ss:$0 sm:$0xff] }
  0x36   : > { %3070 = vmatmul.msk.f32.gmra.mxu1 %vm299_vm1, %v3479_v16 }
  0x3e   : > { %3071 = vmatmul.msk.f32.gmra.mxu1 %vm299_vm1, %v3484_v17 }
  0x46   : > { %3072 = vmatmul.msk.f32.gmra.mxu1 %vm299_vm1, %v3489_v18 }
  0x4e   : > { %3073 = vmatmul.msk.f32.gmra.mxu1 %vm299_vm1, %v3494_v19 }
  0x56   : > { %3074 = vmatmul.msk.f32.gmra.mxu1 %vm299_vm1, %v3499_v20 }
  0x9b   : > { %v694_v23 = vpop.f32.mrf.mxu1 }
  0x9c   : > { %v742_v24 = vmul.f32 2.0, %v694_v23  ;;  %v381_v23 = vld [vmem:[%s240_s12] sm:$0x7] }
  0x9d   : > { %3049 = vmatpush.msk.msra.mxu0 %vm244_vm0, %v381_v23  ;;  %3090 = vmatpush.msk.msra.mxu2 %vm244_vm0, %v381_v23 }
  0x9e   : > { %v761_v25 = vsub.f32 %v3140_v22, %v742_v24  ;;  %v241_v24 = vld [vmem:[%s240_s12] sm:$0x7]  ;;  %3050 = vmatmul.msk.f32.vlgmr.msra.gmra.mxu0 %vm299_vm1, %v3456_v2  ;;  %s3290_s12 = scalar_lea.hbm %s4882_s3, 16 }
  0x9f   : > { %p3292_p1 = scmp.lt.s32.totalorder %s3290_s12, %s3286_s9 }
  0xa0   : > { %v793_v26 = vsel %vm777_vm3, 1e+30, %v761_v25  ;;  %v243_v25 = vmul.f32 %v241_v24, %v241_v24 }
  0xa1   : > { %809 = vmin.xlane.f32.xlu0 %v793_v26  ;;  %p3293_p2 = por %p3292_p1, %p3291_p0 }
  0xa3   : > { %v697_v28 = vpop.f32.mrf.mxu1  ;;  %p3294_p3 = pnand %p3293_p2, %p3289_p13 }
  0xa4   : > { %v743_v29 = vmul.f32 2.0, %v697_v28 }
  0xa6   : > { %v762_v30 = vsub.f32 %v3140_v22, %v743_v29  ;;  %3051 = vmatmul.msk.f32.gmra.mxu0 %vm299_vm1, %v3464_v8 }
  0xa8   : > { %v794_v31 = vsel %vm778_vm4, 1e+30, %v762_v30 }
  0xa9   : > { %811 = vmin.xlane.f32.xlu0 %v794_v31 }
  0xab   : > { %v700_v33 = vpop.f32.mrf.mxu1 }
  0xac   : > { %v744_v34 = vmul.f32 2.0, %v700_v33 }
  0xae   : > { %v763_v35 = vsub.f32 %v3140_v22, %v744_v34  ;;  %3052 = vmatmul.msk.f32.gmra.mxu0 %vm299_vm1, %v3472_v14 }
  0xb0   : > { %v795_v36 = vsel %vm779_vm5, 1e+30, %v763_v35 }
  0xb1   : > { %813 = vmin.xlane.f32.xlu1 %v795_v36 }
  0xb3   : > { %v703_v38 = vpop.f32.mrf.mxu1 }
  0xb4   : > { %v745_v39 = vmul.f32 2.0, %v703_v38 }
  0xb6   : > { %v764_v40 = vsub.f32 %v3140_v22, %v745_v39  ;;  %3053 = vmatmul.msk.f32.gmra.mxu0 %vm299_vm1, %v3479_v16 }
  0xb8   : > { %v796_v41 = vsel %vm780_vm6, 1e+30, %v764_v40 }
  0xb9   : > { %815 = vmin.xlane.f32.xlu1 %v796_v41 }
  0xbb   : > { %v706_v43 = vpop.f32.mrf.mxu1 }
  0xbc   : > { %v746_v44 = vmul.f32 2.0, %v706_v43 }
  0xbe   : > { %v765_v45 = vsub.f32 %v3140_v22, %v746_v44  ;;  %3054 = vmatmul.msk.f32.gmra.mxu0 %vm299_vm1, %v3484_v17 }
  0xc0   : > { %v797_v46 = vsel %vm781_vm7, 1e+30, %v765_v45 }
  0xc1   : > { %817 = vmin.xlane.f32.xlu2 %v797_v46 }
  0xc3   : > { %v709_v48 = vpop.f32.mrf.mxu1 }
  0xc4   : > { %v747_v49 = vmul.f32 2.0, %v709_v48 }
  0xc6   : > { %v766_v50 = vsub.f32 %v3140_v22, %v747_v49  ;;  %3055 = vmatmul.msk.f32.gmra.mxu0 %vm299_vm1, %v3489_v18 }
  0xc8   : > { %v798_v51 = vsel %vm782_vm8, 1e+30, %v766_v50 }
  0xc9   : > { %819 = vmin.xlane.f32.xlu2 %v798_v51 }
  0xcb   : > { %v712_v53 = vpop.f32.mrf.mxu1 }
  0xcc   : > { %v748_v54 = vmul.f32 2.0, %v712_v53 }
  0xce   : > { %v767_v55 = vsub.f32 %v3140_v22, %v748_v54  ;;  %3056 = vmatmul.msk.f32.gmra.mxu0 %vm299_vm1, %v3494_v19 }
  0xd0   : > { %v799_v56 = vsel %vm783_vm9, 1e+30, %v767_v55 }
  0xd1   : > { %821 = vmin.xlane.f32.xlu0 %v799_v56 }
  0xd3   : > { %v715_v58 = vpop.f32.mrf.mxu1 }
  0xd4   : > { %v749_v59 = vmul.f32 2.0, %v715_v58 }
  0xd6   : > { %v768_v60 = vsub.f32 %v3140_v22, %v749_v59  ;;  %3057 = vmatmul.msk.f32.gmra.mxu0 %vm299_vm1, %v3499_v20 }
  0xd8   : > { %v800_v61 = vsel %vm784_vm10, 1e+30, %v768_v60 }
  0xd9   : > { %823 = vmin.xlane.f32.xlu1 %v800_v61 }
 0x114   : > { %v810_v62 = vpop.xlane.xlu0 %809 }
 0x115   : > { %vm841_vm11 = vcmp.eq.f32.partialorder %v793_v26, %v810_v62  ;;  %v889_v30 = vmax.f32 %v810_v62, 1e+30  ;;  %v873_v35 = vmin.f32 %v810_v62, 1e+30 }
 0x116   : > { %v857_v63 = vsel %vm841_vm11, 1e+30, %v793_v26  ;;  %v245_v26 = vsel %vm244_vm0, %v243_v25, 0.0 }
 0x117   : > { %985 = vmin.xlane.f32.xlu2 %v857_v63  ;;  %v246_v27 = vrot.slane %v245_v26, 4  ;;  %v921_v33 = vmax.f32 %v889_v30, 1e+30  ;;  %v905_v37 = vmin.f32 %v889_v30, 1e+30 }
 0x119   : > { %v247_v28 = vadd.f32 %v246_v27, %v245_v26  ;;  %v953_v40 = vmax.f32 %v921_v33, 1e+30  ;;  %v937_v44 = vmin.f32 %v921_v33, 1e+30 }
 0x11b   : > { %v248_v29 = vrot.slane %v247_v28, 2  ;;  %v3577_v47 = vmin.f32 %v953_v40, 1e+30 }
 0x11c   : > { %v3511_v0 = vpop.xlane.xlu0 %811 }
 0x11d   : > { %vm842_vm12 = vcmp.eq.f32.partialorder %v794_v31, %v3511_v0  ;;  %v890_v38 = vmax.f32 %v3511_v0, 1e+30  ;;  %v874_v50 = vmin.f32 %v3511_v0, 1e+30 }
 0x11e   : > { %v3514_v1 = vsel %vm842_vm12, 1e+30, %v794_v31  ;;  %v249_v31 = vadd.f32 %v248_v29, %v247_v28 }
 0x11f   : > { %987 = vmin.xlane.f32.xlu0 %v3514_v1  ;;  %v906_v52 = vmin.f32 %v890_v38, 1e+30 }
 0x120   : > { %v250_v32 = vrot.slane %v249_v31, 1 }
 0x122   : > { %v251_v34 = vadd.f32 %v250_v32, %v249_v31 }
 0x124   : > { %v3517_v3 = vpop.xlane.xlu1 %813 }
 0x125   : > { %vm843_vm13 = vcmp.eq.f32.partialorder %v795_v36, %v3517_v3  ;;  %v891_v55 = vmax.f32 %v3517_v3, 1e+30  ;;  %v875_v24 = vmin.f32 %v3517_v3, 1e+30 }
 0x126   : > { %v3520_v4 = vsel %vm843_vm13, 1e+30, %v795_v36  ;;  %v263_v36 = vsel %vm262_vm2, 1e+30, %v251_v34 }
 0x127   : > { %989 = vmin.xlane.f32.xlu1 %v3520_v4  ;;  %265 = vst [vmem:[#allocation2] sm:$0x1] %v263_v36 }
 0x12c   : > { %v3523_v5 = vpop.xlane.xlu1 %815 }
 0x12d   : > { %vm844_vm14 = vcmp.eq.f32.partialorder %v796_v41, %v3523_v5  ;;  %v892_v26 = vmax.f32 %v3523_v5, 1e+30 }
 0x12e   : > { %v3526_v6 = vsel %vm844_vm14, 1e+30, %v796_v41 }
 0x12f   : > { %991 = vmin.xlane.f32.xlu2 %v3526_v6  ;;  %v924_v34 = vmax.f32 %v892_v26, 1e+30 }
 0x131   : > { %v956_v40 = vmax.f32 %v924_v34, 1e+30 }
 0x134   : > { %v3529_v7 = vpop.xlane.xlu2 %817 }
 0x135   : > { %vm845_vm15 = vcmp.eq.f32.partialorder %v797_v46, %v3529_v7 }
 0x136   : > { %v3532_v9 = vsel %vm845_vm15, 1e+30, %v797_v46  ;;  %v922_v46 = vmax.f32 %v890_v38, 1e+30  ;;  %v876_v38 = vmin.f32 %v3523_v5, 1e+30 }
 0x137   : > { %993 = vmin.xlane.f32.xlu0 %v3532_v9  ;;  %v940_v5 = vmin.f32 %v924_v34, 1e+30 }
 0x138   : > { %v954_v53 = vmax.f32 %v922_v46, 1e+30  ;;  %v938_v59 = vmin.f32 %v922_v46, 1e+30 }
 0x13a   : > { %v3598_v62 = vmin.f32 %v954_v53, 1e+30 }
 0x13c   : > { %v3535_v11 = vpop.xlane.xlu2 %819 }
 0x13d   : > { %vm846_vm3 = vcmp.eq.f32.partialorder %v798_v51, %v3535_v11 }
 0x13e   : > { %v3538_v12 = vsel %vm846_vm3, 1e+30, %v798_v51 }
 0x13f   : > { %995 = vmin.xlane.f32.xlu1 %v3538_v12 }
 0x144   : > { %v3541_v13 = vpop.xlane.xlu0 %821 }
 0x145   : > { %vm847_vm4 = vcmp.eq.f32.partialorder %v799_v56, %v3541_v13 }
 0x146   : > { %v3544_v15 = vsel %vm847_vm4, 1e+30, %v799_v56 }
 0x147   : > { %997 = vmin.xlane.f32.xlu2 %v3544_v15 }
 0x14c   : > { %v3547_v21 = vpop.xlane.xlu1 %823 }
 0x14d   : > { %vm848_vm5 = vcmp.eq.f32.partialorder %v800_v61, %v3547_v21 }
 0x14e   : > { %v3550_v22 = vsel %vm848_vm5, 1e+30, %v800_v61 }
 0x14f   : > { %999 = vmin.xlane.f32.xlu0 %v3550_v22 }
 0x18a   : > { %v986_v39 = vpop.xlane.xlu2 %985 }
 0x18b   : > { %v3570_v41 = vmin.f32 %v873_v35, %v986_v39  ;;  %v1065_v42 = vmax.f32 %v873_v35, %v986_v39  ;;  %vm1017_vm0 = vcmp.eq.f32.partialorder %v857_v63, %v986_v39 }
 0x18c   : > { %v3572_v43 = vsel %vm1017_vm0, 1e+30, %v857_v63  ;;  %v923_v63 = vmax.f32 %v891_v55, 1e+30 }
 0x18d   : > { %v3574_v45 = vmin.f32 %v905_v37, %v1065_v42  ;;  %v1097_v10 = vmax.f32 %v905_v37, %v1065_v42  ;;  %1161 = vmin.xlane.f32.xlu1 %v3572_v43 }
 0x18e   : > { %v955_v28 = vmax.f32 %v923_v63, 1e+30  ;;  %v939_v3 = vmin.f32 %v923_v63, 1e+30 }
 0x18f   : > { %v3579_v48 = vmin.f32 %v937_v44, %v1097_v10  ;;  %v3581_v49 = vmax.f32 %v937_v44, %v1097_v10  ;;  %v893_v44 = vmax.f32 %v3529_v7, 1e+30 }
 0x190   : > { %v3619_v35 = vmin.f32 %v955_v28, 1e+30 }
 0x191   : > { %v1145_v51 = vmin.f32 %v3577_v47, %v3581_v49 }
 0x192   : > { %v988_v54 = vpop.xlane.xlu0 %987 }
 0x193   : > { %v3589_v56 = vmin.f32 %v874_v50, %v988_v54  ;;  %v1066_v57 = vmax.f32 %v874_v50, %v988_v54  ;;  %vm1018_vm2 = vcmp.eq.f32.partialorder %v3514_v1, %v988_v54  ;;  %v3640_v54 = vmin.f32 %v956_v40, 1e+30 }
 0x194   : > { %v3593_v58 = vsel %vm1018_vm2, 1e+30, %v3514_v1  ;;  %v907_v1 = vmin.f32 %v891_v55, 1e+30  ;;  %v925_v55 = vmax.f32 %v893_v44, 1e+30 }
 0x195   : > { %v3595_v60 = vmin.f32 %v906_v52, %v1066_v57  ;;  %v1098_v61 = vmax.f32 %v906_v52, %v1066_v57  ;;  %1163 = vmin.xlane.f32.xlu2 %v3593_v58 }
 0x197   : > { %v3600_v0 = vmin.f32 %v938_v59, %v1098_v61  ;;  %v3602_v23 = vmax.f32 %v938_v59, %v1098_v61  ;;  %v877_v61 = vmin.f32 %v3529_v7, 1e+30 }
 0x199   : > { %v1146_v25 = vmin.f32 %v3598_v62, %v3602_v23 }
 0x19a   : > { %v990_v27 = vpop.xlane.xlu1 %989 }
 0x19b   : > { %v3610_v29 = vmin.f32 %v875_v24, %v990_v27  ;;  %v1067_v30 = vmax.f32 %v875_v24, %v990_v27  ;;  %vm1019_vm6 = vcmp.eq.f32.partialorder %v3520_v4, %v990_v27 }
 0x19c   : > { %v3614_v31 = vsel %vm1019_vm6, 1e+30, %v3520_v4  ;;  %v908_v4 = vmin.f32 %v892_v26, 1e+30 }
 0x19d   : > { %v3616_v32 = vmin.f32 %v907_v1, %v1067_v30  ;;  %v1099_v33 = vmax.f32 %v907_v1, %v1067_v30  ;;  %1165 = vmin.xlane.f32.xlu0 %v3614_v31  ;;  %v957_v1 = vmax.f32 %v925_v55, 1e+30  ;;  %v941_v30 = vmin.f32 %v925_v55, 1e+30 }
 0x19f   : > { %v3621_v36 = vmin.f32 %v939_v3, %v1099_v33  ;;  %v3623_v37 = vmax.f32 %v939_v3, %v1099_v33  ;;  %v3660_v33 = vmin.f32 %v957_v1, 1e+30 }
 0x1a1   : > { %v1147_v39 = vmin.f32 %v3619_v35, %v3623_v37 }
 0x1a2   : > { %v992_v42 = vpop.xlane.xlu2 %991 }
 0x1a3   : > { %v3631_v10 = vmin.f32 %v876_v38, %v992_v42  ;;  %v1068_v46 = vmax.f32 %v876_v38, %v992_v42  ;;  %vm1020_vm7 = vcmp.eq.f32.partialorder %v3526_v6, %v992_v42  ;;  %v283_v42 = vmul.f32 %v3456_v2, %v3456_v2 }
 0x1a4   : > { %v3635_v50 = vsel %vm1020_vm7, 1e+30, %v3526_v6  ;;  %v909_v6 = vmin.f32 %v893_v44, 1e+30 }
 0x1a5   : > { %v3637_v52 = vmin.f32 %v908_v4, %v1068_v46  ;;  %v1100_v53 = vmax.f32 %v908_v4, %v1068_v46  ;;  %1167 = vmin.xlane.f32.xlu1 %v3635_v50  ;;  %v300_v46 = vsel %vm299_vm1, %v283_v42, 0.0 }
 0x1a7   : > { %v3642_v57 = vmin.f32 %v940_v5, %v1100_v53  ;;  %v3644_v59 = vmax.f32 %v940_v5, %v1100_v53  ;;  %v284_v53 = vmul.f32 %v3464_v8, %v3464_v8 }
 0x1a9   : > { %v1148_v63 = vmin.f32 %v3640_v54, %v3644_v59 }
 0x1aa   : > { %v994_v24 = vpop.xlane.xlu0 %993 }
 0x1ab   : > { %v3651_v26 = vmin.f32 %v877_v61, %v994_v24  ;;  %v1069_v27 = vmax.f32 %v877_v61, %v994_v24  ;;  %vm1021_vm8 = vcmp.eq.f32.partialorder %v3532_v9, %v994_v24  ;;  %v303_v61 = vsel %vm299_vm1, %v284_v53, 0.0 }
 0x1ac   : > { %v3655_v28 = vsel %vm1021_vm8, 1e+30, %v3532_v9 }
 0x1ad   : > { %v3657_v3 = vmin.f32 %v909_v6, %v1069_v27  ;;  %v1101_v7 = vmax.f32 %v909_v6, %v1069_v27  ;;  %1169 = vmin.xlane.f32.xlu2 %v3655_v28  ;;  %v287_v6 = vmul.f32 %v3484_v17, %v3484_v17  ;;  %v3718_v17 = vpop.f32.mrf.mxu0 }
 0x1af   : > { %v3662_v34 = vmin.f32 %v941_v30, %v1101_v7  ;;  %v3664_v38 = vmax.f32 %v941_v30, %v1101_v7  ;;  %v312_v24 = vsel %vm299_vm1, %v287_v6, 0.0 }
 0x1b1   : > { %v1149_v4 = vmin.f32 %v3660_v33, %v3664_v38  ;;  %v289_v38 = vmul.f32 %v3494_v19, %v3494_v19 }
 0x1b2   : > { %v3670_v9 = vpop.xlane.xlu1 %995 }
 0x1b3   : > { %vm1022_vm9 = vcmp.eq.f32.partialorder %v3538_v12, %v3670_v9 }
 0x1b4   : > { %v3675_v40 = vsel %vm1022_vm9, 1e+30, %v3538_v12  ;;  %v285_v12 = vmul.f32 %v3472_v14, %v3472_v14  ;;  %v288_v14 = vmul.f32 %v3489_v18, %v3489_v18 }
 0x1b5   : > { %1171 = vmin.xlane.f32.xlu0 %v3675_v40 }
 0x1b6   : > { %v306_v55 = vsel %vm299_vm1, %v285_v12, 0.0  ;;  %v315_v8 = vsel %vm299_vm1, %v288_v14, 0.0  ;;  %v3743_v14 = vpop.f32.mrf.mxu0 }
 0x1b7   : > { %v500_v19 = vmul.f32 2.0, %v3743_v14 }
 0x1ba   : > { %v3680_v44 = vpop.xlane.xlu2 %997 }
 0x1bb   : > { %vm1023_vm10 = vcmp.eq.f32.partialorder %v3544_v15, %v3680_v44 }
 0x1bc   : > { %v3686_v5 = vsel %vm1023_vm10, 1e+30, %v3544_v15 }
 0x1bd   : > { %1173 = vmin.xlane.f32.xlu1 %v3686_v5  ;;  %301 = vadd.xlane.f32.xlu0 %v300_v46 }
 0x1c2   : > { %v3693_v2 = vpop.xlane.xlu0 %999 }
 0x1c3   : > { %vm1024_vm11 = vcmp.eq.f32.partialorder %v3550_v22, %v3693_v2 }
 0x1c4   : > { %v3700_v15 = vsel %vm1024_vm11, 1e+30, %v3550_v22  ;;  %v286_v22 = vmul.f32 %v3479_v16, %v3479_v16 }
 0x1c5   : > { %1175 = vmin.xlane.f32.xlu2 %v3700_v15  ;;  %307 = vadd.xlane.f32.xlu0 %v306_v55 }
 0x1c6   : > { %304 = vadd.xlane.f32.xlu1 %v303_v61  ;;  %v309_v1 = vsel %vm299_vm1, %v286_v22, 0.0 }
 0x1cd   : > { %316 = vadd.xlane.f32.xlu0 %v315_v8  ;;  %310 = vadd.xlane.f32.xlu2 %v309_v1 }
 0x1ce   : > { %313 = vadd.xlane.f32.xlu1 %v312_v24 }
 0x200   : > { %v1162_v27 = vpop.xlane.xlu1 %1161 }
 0x201   : > { %v3713_v30 = vmin.f32 %v3570_v41, %v1162_v27  ;;  %v1241_v18 = vmax.f32 %v3570_v41, %v1162_v27  ;;  %vm1193_vm12 = vcmp.eq.f32.partialorder %v3572_v43, %v1162_v27 }
 0x202   : > { %v1209_v7 = vsel %vm1193_vm12, 1e+30, %v3572_v43 }
 0x203   : > { %v3721_v42 = vmin.f32 %v3574_v45, %v1241_v18  ;;  %v1273_v16 = vmax.f32 %v3574_v45, %v1241_v18  ;;  %1337 = vmin.xlane.f32.xlu0 %v1209_v7 }
 0x205   : > { %v3725_v46 = vmin.f32 %v3579_v48, %v1273_v16  ;;  %v1305_v12 = vmax.f32 %v3579_v48, %v1273_v16 }
 0x207   : > { %v3731_v41 = vmin.f32 %v1145_v51, %v1305_v12 }
 0x208   : > { %v1164_v53 = vpop.xlane.xlu2 %1163 }
 0x209   : > { %v3734_v43 = vmin.f32 %v3589_v56, %v1164_v53  ;;  %v1242_v55 = vmax.f32 %v3589_v56, %v1164_v53  ;;  %vm1194_vm13 = vcmp.eq.f32.partialorder %v3593_v58, %v1164_v53 }
 0x20a   : > { %v1210_v45 = vsel %vm1194_vm13, 1e+30, %v3593_v58  ;;  %vm630_vm13 = vcmask 7168  }
 0x20b   : > { %v3740_v61 = vmin.f32 %v3595_v60, %v1242_v55  ;;  %v1274_v48 = vmax.f32 %v3595_v60, %v1242_v55  ;;  %1339 = vmin.xlane.f32.xlu1 %v1210_v45  ;;  %v3141_v55 = vld [vmem:[#allocation2] ss:$0 sm:$0xff] }
 0x20d   : > { %v3746_v47 = vmin.f32 %v3600_v0, %v1274_v48  ;;  %v1306_v49 = vmax.f32 %v3600_v0, %v1274_v48 }
 0x20f   : > { %v3752_v51 = vmin.f32 %v1146_v25, %v1306_v49  ;;  %v457_v25 = vpop.f32.mrf.mxu0  ;;  %v499_v49 = vmul.f32 2.0, %v3718_v17 }
 0x210   : > { %v1166_v56 = vpop.xlane.xlu0 %1165 }
 0x211   : > { %v3755_v58 = vmin.f32 %v3610_v29, %v1166_v56  ;;  %v1243_v8 = vmax.f32 %v3610_v29, %v1166_v56  ;;  %vm1195_vm14 = vcmp.eq.f32.partialorder %v3614_v31, %v1166_v56 }
 0x212   : > { %v1211_v60 = vsel %vm1195_vm14, 1e+30, %v3614_v31 }
 0x213   : > { %v3761_v6 = vmin.f32 %v3616_v32, %v1243_v8  ;;  %v1275_v0 = vmax.f32 %v3616_v32, %v1243_v8  ;;  %1341 = vmin.xlane.f32.xlu2 %v1211_v60  ;;  %v518_v60 = vsub.f32 %v3141_v55, %v499_v49 }
 0x215   : > { %v3765_v62 = vmin.f32 %v3621_v36, %v1275_v0  ;;  %v1307_v23 = vmax.f32 %v3621_v36, %v1275_v0  ;;  %v519_v0 = vsub.f32 %v3141_v55, %v500_v19 }
 0x217   : > { %v3771_v29 = vmin.f32 %v1147_v39, %v1307_v23  ;;  %v460_v27 = vpop.f32.mrf.mxu0 }
 0x218   : > { %v1168_v24 = vpop.xlane.xlu1 %1167  ;;  %v502_v23 = vmul.f32 2.0, %v460_v27  ;;  %v894_v27 = vmax.f32 %v3535_v11, 1e+30 }
 0x219   : > { %v3774_v31 = vmin.f32 %v3631_v10, %v1168_v24  ;;  %v1244_v22 = vmax.f32 %v3631_v10, %v1168_v24  ;;  %vm1196_vm15 = vcmp.eq.f32.partialorder %v3635_v50, %v1168_v24 }
 0x21a   : > { %v1212_v32 = vsel %vm1196_vm15, 1e+30, %v3635_v50 }
 0x21b   : > { %v3780_v1 = vmin.f32 %v3637_v52, %v1244_v22  ;;  %v1276_v36 = vmax.f32 %v3637_v52, %v1244_v22  ;;  %1343 = vmin.xlane.f32.xlu2 %v1212_v32 }
 0x21d   : > { %v3784_v35 = vmin.f32 %v3642_v57, %v1276_v36  ;;  %v1308_v37 = vmax.f32 %v3642_v57, %v1276_v36 }
 0x21f   : > { %v3790_v39 = vmin.f32 %v1148_v63, %v1308_v37  ;;  %v463_v16 = vpop.f32.mrf.mxu0 }
 0x220   : > { %v1170_v10 = vpop.xlane.xlu2 %1169 }
 0x221   : > { %v3793_v50 = vmin.f32 %v3651_v26, %v1170_v10  ;;  %v1245_v18 = vmax.f32 %v3651_v26, %v1170_v10  ;;  %vm1197_vm3 = vcmp.eq.f32.partialorder %v3655_v28, %v1170_v10 }
 0x222   : > { %v1213_v52 = vsel %vm1197_vm3, 1e+30, %v3655_v28 }
 0x223   : > { %v3799_v7 = vmin.f32 %v3657_v3, %v1245_v18  ;;  %v1277_v57 = vmax.f32 %v3657_v3, %v1245_v18  ;;  %1345 = vmin.xlane.f32.xlu1 %v1213_v52  ;;  %v290_v3 = vmul.f32 %v3499_v20, %v3499_v20  ;;  %v318_v20 = vsel %vm299_vm1, %v289_v38, 0.0 }
 0x224   : > { %v879_v38 = vmin.f32 %v3541_v13, 1e+30 }
 0x225   : > { %v3803_v54 = vmin.f32 %v3662_v34, %v1277_v57  ;;  %v1309_v59 = vmax.f32 %v3662_v34, %v1277_v57  ;;  %v321_v34 = vsel %vm299_vm1, %v290_v3, 0.0  ;;  %v895_v57 = vmax.f32 %v3541_v13, 1e+30 }
 0x226   : > { %v878_v3 = vmin.f32 %v3535_v11, 1e+30  ;;  %v1071_v49 = vmax.f32 %v879_v38, %v3680_v44 }
 0x227   : > { %v3809_v63 = vmin.f32 %v1149_v4, %v1309_v59  ;;  %v466_v4 = vpop.f32.mrf.mxu0  ;;  %v926_v59 = vmax.f32 %v894_v27, 1e+30  ;;  %v911_v19 = vmin.f32 %v895_v57, 1e+30 }
 0x228   : > { %v3811_v26 = vpop.xlane.xlu0 %1171 }
 0x229   : > { %vm1198_vm4 = vcmp.eq.f32.partialorder %v3675_v40, %v3811_v26 }
 0x22a   : > { %v1214_v28 = vsel %vm1198_vm4, 1e+30, %v3675_v40  ;;  %v501_v40 = vmul.f32 2.0, %v457_v25  ;;  %v503_v25 = vmul.f32 2.0, %v463_v16 }
 0x22b   : > { %1347 = vmin.xlane.f32.xlu0 %v1214_v28  ;;  %v896_v28 = vmax.f32 %v3547_v21, 1e+30 }
 0x22c   : > { %v520_v48 = vsub.f32 %v3141_v55, %v501_v40  ;;  %v522_v22 = vsub.f32 %v3141_v55, %v503_v25  ;;  %v942_v25 = vmin.f32 %v926_v59, 1e+30 }
 0x22f   : > { %v469_v56 = vpop.f32.mrf.mxu0 }
 0x230   : > { %v3818_v12 = vpop.xlane.xlu1 %1173  ;;  %v505_v32 = vmul.f32 2.0, %v469_v56  ;;  %v3834_v14 = vpop.xlane.xlu0 %301 }
 0x231   : > { %vm1199_vm5 = vcmp.eq.f32.partialorder %v3686_v5, %v3818_v12 }
 0x232   : > { %v1215_v33 = vsel %vm1199_vm5, 1e+30, %v3686_v5  ;;  %v504_v5 = vmul.f32 2.0, %v466_v4  ;;  %v524_v37 = vsub.f32 %v3141_v55, %v505_v32  ;;  %v1070_v4 = vmax.f32 %v878_v3, %v3670_v9 }
 0x233   : > { %1349 = vmin.xlane.f32.xlu2 %v1215_v33  ;;  %322 = vadd.xlane.f32.xlu0 %v321_v34  ;;  %v927_v34 = vmax.f32 %v895_v57, 1e+30  ;;  %v1103_v32 = vmax.f32 %v911_v19, %v1071_v49 }
 0x234   : > { %v523_v8 = vsub.f32 %v3141_v55, %v504_v5  ;;  %v880_v5 = vmin.f32 %v3547_v21, 1e+30 }
 0x235   : > { %v959_v56 = vmax.f32 %v927_v34, 1e+30 }
 0x237   : > { %v472_v24 = vpop.f32.mrf.mxu0 }
 0x238   : > { %v3826_v53 = vpop.xlane.xlu2 %1175  ;;  %v506_v36 = vmul.f32 2.0, %v472_v24  ;;  %v3836_v10 = vpop.xlane.xlu0 %307 }
 0x239   : > { %vm1200_vm0 = vcmp.eq.f32.partialorder %v3700_v15, %v3826_v53  ;;  %v3838_v18 = vpop.xlane.xlu1 %304 }
 0x23a   : > { %v1216_v45 = vsel %vm1200_vm0, 1e+30, %v3700_v15  ;;  %v521_v15 = vsub.f32 %v3141_v55, %v502_v23  ;;  %v525_v17 = vsub.f32 %v3141_v55, %v506_v36  ;;  %v910_v55 = vmin.f32 %v894_v27, 1e+30 }
 0x23b   : > { %1351 = vmin.xlane.f32.xlu1 %v1216_v45  ;;  %319 = vadd.xlane.f32.xlu2 %v318_v20  ;;  %v958_v45 = vmax.f32 %v926_v59, 1e+30 }
 0x23c   : > { %538 = vmin.xlane.f32.xlu0 %v520_v48  ;;  %v928_v48 = vmax.f32 %v896_v28, 1e+30 }
 0x23d   : > { %v974_v24 = vmin.f32 %v958_v45, 1e+30 }
 0x240   : > { %v3840_v52 = vpop.xlane.xlu0 %316 }
 0x241   : > { %4907 = vst [vmem:[#allocation10_spill] sm:$0xff] %v3840_v52  ;;  %v3845_v16 = vpop.xlane.xlu1 %313 }
 0x243   : > { %534 = vmin.xlane.f32.xlu1 %v518_v60  ;;  %536 = vmin.xlane.f32.xlu2 %v519_v0  ;;  %v1102_v60 = vmax.f32 %v910_v55, %v1070_v4  ;;  %v1072_v0 = vmax.f32 %v880_v5, %v3693_v2 }
 0x244   : > { %544 = vmin.xlane.f32.xlu0 %v523_v8  ;;  %v1054_v8 = vmin.f32 %v878_v3, %v3670_v9  ;;  %v1086_v3 = vmin.f32 %v910_v55, %v1070_v4 }
 0x246   : > { %v1246_v9 = vmax.f32 %v1054_v8, %v3811_v26 }
 0x24b   : > { %540 = vmin.xlane.f32.xlu1 %v521_v15  ;;  %542 = vmin.xlane.f32.xlu2 %v522_v22  ;;  %v960_v15 = vmax.f32 %v928_v48, 1e+30  ;;  %v912_v22 = vmin.f32 %v896_v28, 1e+30  ;;  %v1055_v28 = vmin.f32 %v879_v38, %v3680_v44 }
 0x24d   : > { %v1104_v59 = vmax.f32 %v912_v22, %v1072_v0  ;;  %v1088_v52 = vmin.f32 %v912_v22, %v1072_v0  ;;  %v3912_v0 = vmin.f32 %v1086_v3, %v1246_v9 }
 0x253   : > { %546 = vmin.xlane.f32.xlu1 %v524_v37  ;;  %548 = vmin.xlane.f32.xlu2 %v525_v17  ;;  %v943_v37 = vmin.f32 %v927_v34, 1e+30  ;;  %v3875_v17 = vmin.f32 %v959_v56, 1e+30  ;;  %v1056_v34 = vmin.f32 %v880_v5, %v3693_v2 }
 0x255   : > { %v1248_v2 = vmax.f32 %v1056_v34, %v3826_v53 }
 0x257   : > { %v1280_v22 = vmax.f32 %v1088_v52, %v1248_v2 }
 0x276   : > { %v1338_v33 = vpop.xlane.xlu0 %1337 }
 0x277   : > { %v1369_v40 = vmin.f32 %v3713_v30, %v1338_v33  ;;  %v3852_v20 = vmax.f32 %v3713_v30, %v1338_v33 }
 0x279   : > { %v1401_v11 = vmin.f32 %v3721_v42, %v3852_v20  ;;  %v3860_v13 = vmax.f32 %v3721_v42, %v3852_v20  ;;  %v1481_v30 = vadd.f32 %v1369_v40, %v3834_v14  ;;  %v3869_v42 = vpop.xlane.xlu2 %310  ;;  %v944_v40 = vmin.f32 %v928_v48, 1e+30 }
 0x27a   : > { %v3880_v20 = vmin.f32 %v960_v15, 1e+30  ;;  %v1118_v48 = vmin.f32 %v942_v25, %v1102_v60 }
 0x27b   : > { %v1433_v21 = vmin.f32 %v3725_v46, %v3860_v13  ;;  %v1449_v23 = vmax.f32 %v3725_v46, %v3860_v13  ;;  %v3877_v27 = vmax.f32 %v1481_v30, 1e-12  ;;  %v1134_v46 = vmax.f32 %v942_v25, %v1102_v60 }
 0x27c   : > { %v1278_v13 = vmax.f32 %v1086_v3, %v1246_v9  ;;  %v1247_v30 = vmax.f32 %v1055_v28, %v3818_v12  ;;  %v1136_v44 = vmax.f32 %v944_v40, %v1104_v59 }
 0x27d   : > { %v3873_v36 = vmin.f32 %v3731_v41, %v1449_v23  ;;  %v1135_v41 = vmax.f32 %v943_v37, %v1103_v32  ;;  %3142 = vrsqrt.f32 %v3877_v27  ;;  %v1150_v23 = vmin.f32 %v974_v24, %v1134_v46 }
 0x27e   : > { %v1340_v57 = vpop.xlane.xlu1 %1339  ;;  %v3906_v24 = vmin.f32 %v1054_v8, %v3811_v26  ;;  %v1705_v3 = vsub.f32 0.0, %v3877_v27  ;;  %vm1520_vm2 = vcmp.eq.f32.partialorder %v3877_v27, inf  ;;  %vm1522_vm7 = vcmp.eq.f32.partialorder %v3877_v27, 0.0 }
 0x27f   : > { %v1370_v33 = vmin.f32 %v3734_v43, %v1340_v57  ;;  %v1386_v45 = vmax.f32 %v3734_v43, %v1340_v57  ;;  %v1087_v43 = vmin.f32 %v911_v19, %v1071_v49  ;;  %v1119_v57 = vmin.f32 %v943_v37, %v1103_v32 }
 0x280   : > { %v1152_v19 = vmin.f32 %v3880_v20, %v1136_v44 }
 0x281   : > { %v1482_v56 = vadd.f32 %v1370_v33, %v3838_v18  ;;  %v1402_v4 = vmin.f32 %v3740_v61, %v1386_v45  ;;  %v3890_v55 = vmax.f32 %v3740_v61, %v1386_v45  ;;  %v1151_v33 = vmin.f32 %v3875_v17, %v1135_v41 }
 0x282   : > { %v1120_v61 = vmin.f32 %v944_v40, %v1104_v59  ;;  %v1310_v45 = vmax.f32 %v1118_v48, %v1278_v13  ;;  %v1279_v60 = vmax.f32 %v1087_v43, %v1247_v30  ;;  %v2153_v17 = vadd.f32 %v1433_v21, %v3834_v14 }
 0x283   : > { %v3892_v38 = vmax.f32 %v1482_v56, 1e-12  ;;  %v1434_v5 = vmin.f32 %v3746_v47, %v3890_v55  ;;  %v1450_v15 = vmax.f32 %v3746_v47, %v3890_v55  ;;  %v3910_v37 = vpop.eup %3142  ;;  %v3916_v59 = vmin.f32 %v1118_v48, %v1278_v13 }
 0x284   : > { %v3923_v20 = vmin.f32 %v1150_v23, %v1310_v45  ;;  %v1311_v9 = vmax.f32 %v1119_v57, %v1279_v60  ;;  %v3939_v56 = vmin.f32 %v1087_v43, %v1247_v30  ;;  %v3943_v48 = vmax.f32 %v2153_v17, 1e-12 }
 0x285   : > { %v3901_v25 = vmin.f32 %v3752_v51, %v1450_v15  ;;  %3144 = vrsqrt.f32 %v3892_v38  ;;  %v1817_v51 = vadd.f32 %v1401_v11, %v3834_v14  ;;  %v1514_v11 = vmul.f32 %v3910_v37, %v3877_v27 }
 0x286   : > { %v1342_v49 = vpop.xlane.xlu2 %1341  ;;  %v2489_v23 = vadd.f32 %v3873_v36, %v3834_v14  ;;  %v1818_v44 = vadd.f32 %v1402_v4, %v3838_v18  ;;  %v3952_v45 = vmin.f32 %v1151_v33, %v1311_v9  ;;  %v3955_v30 = vmin.f32 %v1056_v34, %v3826_v53 }
 0x287   : > { %v1371_v46 = vmin.f32 %v3755_v58, %v1342_v49  ;;  %v1387_v32 = vmax.f32 %v3755_v58, %v1342_v49  ;;  %v3926_v58 = vmin.f32 %v1055_v28, %v3818_v12  ;;  %v1312_v12 = vmax.f32 %v1120_v61, %v1280_v22 }
 0x288   : > { %v3941_v28 = vmax.f32 %v1817_v51, 1e-12  ;;  %v1721_v49 = vmul.f32 1111.1111, %v1705_v3  ;;  %v3970_v34 = vmax.f32 %v2489_v23, 1e-12  ;;  %v2490_v47 = vadd.f32 %v3901_v25, %v3838_v18 }
 0x289   : > { %v1403_v40 = vmin.f32 %v3761_v6, %v1387_v32  ;;  %v3920_v26 = vmax.f32 %v3761_v6, %v1387_v32  ;;  %v1483_v8 = vadd.f32 %v1371_v46, %v3836_v10  ;;  %v3957_v46 = vmin.f32 %v1088_v52, %v1248_v2 }
 0x28a   : > { %v3959_v32 = vmin.f32 %v1120_v61, %v1280_v22  ;;  %v3964_v4 = vmin.f32 %v1152_v19, %v1312_v12  ;;  %4908 = vst [vmem:[#allocation11_spill] sm:$0xff] %v3970_v34  ;;  %v3972_v52 = vmax.f32 %v1818_v44, 1e-12  ;;  %v3978_v19 = vmul.f32 1.442695, %v1721_v49 }
 0x28b   : > { %v1435_v21 = vmin.f32 %v3765_v62, %v3920_v26  ;;  %v1451_v6 = vmax.f32 %v3765_v62, %v3920_v26  ;;  %v3935_v41 = vmax.f32 %v1483_v8, 1e-12  ;;  %v3937_v13 = vpop.eup %3144  ;;  %v3950_v62 = vmin.f32 %v1119_v57, %v1279_v60 }
 0x28c   : > { %v1526_v36 = vmul.f32 %v3937_v13, %v3892_v38  ;;  %v1706_v26 = vsub.f32 0.0, %v3892_v38  ;;  %v1819_v55 = vadd.f32 %v1403_v40, %v3836_v10  ;;  %vm1532_vm6 = vcmp.eq.f32.partialorder %v3892_v38, inf }
 0x28d   : > { %v1467_v15 = vmin.f32 %v3771_v29, %v1451_v6  ;;  %3146 = vrsqrt.f32 %v3935_v41  ;;  %v1515_v29 = vmul.f32 %v3910_v37, %v1514_v11  ;;  %vm1544_vm8 = vcmp.eq.f32.partialorder %v3935_v41, inf }
 0x28e   : > { %v1344_v43 = vpop.xlane.xlu2 %1343  ;;  %3148 = vrsqrt.f32 %v3941_v28  ;;  %v1527_v17 = vmul.f32 %v3937_v13, %v1526_v36  ;;  %v2155_v36 = vadd.f32 %v1435_v21, %v3836_v10  ;;  %v1722_v21 = vmul.f32 1111.1111, %v1706_v26 }
 0x28f   : > { %v1372_v57 = vmin.f32 %v3774_v31, %v1344_v43  ;;  %v1388_v53 = vmax.f32 %v3774_v31, %v1344_v43  ;;  %3150 = vrsqrt.f32 %v3943_v48  ;;  %v2154_v31 = vadd.f32 %v1434_v5, %v3838_v18 }
 0x290   : > { %v1516_v51 = vmul.f32 0.5, %v1515_v29  ;;  %3152 = vrsqrt.f32 %v3972_v52  ;;  %v1528_v49 = vmul.f32 0.5, %v1527_v17  ;;  %vm1534_vm9 = vcmp.eq.f32.partialorder %v3892_v38, 0.0 }
 0x291   : > { %v1404_v33 = vmin.f32 %v3780_v1, %v1388_v53  ;;  %v1420_v61 = vmax.f32 %v3780_v1, %v1388_v53  ;;  %v1484_v60 = vadd.f32 %v1372_v57, %v3869_v42  ;;  %v4009_v43 = vmax.f32 %v2154_v31, 1e-12 }
 0x292   : > { %v1517_v29 = vsub.f32 1.5, %v1516_v51  ;;  %v2491_v53 = vadd.f32 %v1467_v15, %v3836_v10  ;;  %v4022_v31 = vmax.f32 %v2490_v47, 1e-12  ;;  %vm1546_vm10 = vcmp.eq.f32.partialorder %v3935_v41, 0.0 }
 0x293   : > { %v3980_v22 = vpop.eup %3146  ;;  %v1436_v1 = vmin.f32 %v3784_v35, %v1420_v61  ;;  %v1452_v9 = vmax.f32 %v3784_v35, %v1420_v61  ;;  %v3992_v3 = vmax.f32 %v1484_v60, 1e-12  ;;  %v1820_v5 = vadd.f32 %v1404_v33, %v3869_v42 }
 0x294   : > { %v1538_v8 = vmul.f32 %v3980_v22, %v3935_v41  ;;  %v3999_v11 = vpop.eup %3148  ;;  %4910 = vst [vmem:[#allocation13_spill] sm:$0xff] %v4022_v31  ;;  %v1518_v47 = vmul.f32 %v3910_v37, %v1517_v29 }
 0x295   : > { %v1468_v6 = vmin.f32 %v3790_v39, %v1452_v9  ;;  %3154 = vrsqrt.f32 %v3992_v3  ;;  %v4004_v12 = vadd.f32 %v1436_v1, %v3869_v42  ;;  %v4007_v44 = vpop.eup %3150  ;;  %v1529_v1 = vsub.f32 1.5, %v1528_v49 }
 0x296   : > { %v1346_v35 = vpop.xlane.xlu1 %1345  ;;  %v1539_v23 = vmul.f32 %v3980_v22, %v1538_v8  ;;  %3156 = vrsqrt.f32 %v3970_v34  ;;  %v4026_v17 = vpop.eup %3152  ;;  %vm1556_vm11 = vcmp.eq.f32.partialorder %v3992_v3, inf  ;;  %vm1558_vm12 = vcmp.eq.f32.partialorder %v3992_v3, 0.0 }
 0x297   : > { %v1373_v25 = vmin.f32 %v3793_v50, %v1346_v35  ;;  %v1389_v40 = vmax.f32 %v3793_v50, %v1346_v35  ;;  %v4015_v39 = vadd.f32 %v1468_v6, %v3869_v42  ;;  %v4024_v50 = vmax.f32 %v1819_v55, 1e-12 }
 0x298   : > { %v1540_v57 = vmul.f32 0.5, %v1539_v23  ;;  %3158 = vrsqrt.f32 %v4009_v43  ;;  %v4039_v55 = vmax.f32 %v2491_v53, 1e-12  ;;  %v4048_v35 = vmul.f32 %v3999_v11, %v3941_v28 }
 0x299   : > { %4909 = vst [vmem:[#allocation12_spill] sm:$0xff] %v4015_v39  ;;  %v1405_v33 = vmin.f32 %v3799_v7, %v1389_v40  ;;  %v1421_v61 = vmax.f32 %v3799_v7, %v1389_v40  ;;  %v1485_v60 = vadd.f32 %v1373_v25, %v3845_v16  ;;  %v4035_v7 = vmax.f32 %v2155_v36, 1e-12 }
 0x29a   : > { %v1541_v26 = vsub.f32 1.5, %v1540_v57  ;;  %4912 = vst [vmem:[#allocation15_spill] sm:$0xff] %v4039_v55  ;;  %v4054_v25 = vmul.f32 1.442695, %v1722_v21  ;;  %v1530_v49 = vmul.f32 %v3937_v13, %v1529_v1  ;;  %v1519_v57 = vmul.f32 %v1518_v47, %v3877_v27 }
 0x29b   : > { %v1437_v51 = vmin.f32 %v3803_v54, %v1421_v61  ;;  %v1453_v8 = vmax.f32 %v3803_v54, %v1421_v61  ;;  %v4030_v15 = vmax.f32 %v1485_v60, 1e-12  ;;  %v4032_v9 = vpop.eup %3154  ;;  %4911 = vst [vmem:[#allocation14_spill] sm:$0xff] %v4035_v7  ;;  %v4915_v61 = vld [vmem:[#allocation10_spill] sm:$0xff]  ;;  %v1707_v21 = vsub.f32 0.0, %v3935_v41 }
 0x29c   : > { %v1550_v37 = vmul.f32 %v4032_v9, %v3992_v3  ;;  %v4065_v36 = vpop.eup %3156  ;;  %v1542_v53 = vmul.f32 %v3980_v22, %v1541_v26  ;;  %v4078_v1 = vmax.f32 %v1820_v5, 1e-12 }
 0x29d   : > { %v4042_v6 = vmin.f32 %v3809_v63, %v1453_v8  ;;  %3160 = vrsqrt.f32 %v4030_v15  ;;  %v4058_v63 = vmul.f32 %v4026_v17, %v3972_v52  ;;  %4914 = vst [vmem:[#allocation17_spill] sm:$0xff] %v4065_v36  ;;  %vm1568_vm14 = vcmp.eq.f32.partialorder %v4030_v15, inf }
 0x29e   : > { %3162 = vrsqrt.f32 %v4022_v31  ;;  %v1348_v23 = vpop.xlane.xlu0 %1347  ;;  %v1551_v13 = vmul.f32 %v4032_v9, %v1550_v37  ;;  %v4076_v8 = vpop.eup %3158  ;;  %v1531_v37 = vmul.f32 %v1530_v49, %v3892_v38  ;;  %v1521_v49 = vsel %vm1520_vm2, %v3877_v27, %v1519_v57 }
 0x29f   : > { %4913 = vst [vmem:[#allocation16_spill] sm:$0xff] %v4042_v6  ;;  %3164 = vrsqrt.f32 %v4024_v50  ;;  %v1374_v40 = vmin.f32 %v3906_v24, %v1348_v23  ;;  %v1390_v29 = vmax.f32 %v3906_v24, %v1348_v23  ;;  %v1821_v24 = vadd.f32 %v1405_v33, %v3845_v16 }
 0x2a0   : > { %3166 = vrsqrt.f32 %v4035_v7  ;;  %v2157_v23 = vadd.f32 %v1437_v51, %v3845_v16  ;;  %v4094_v33 = vmax.f32 %v4004_v12, 1e-12  ;;  %vm1570_vm15 = vcmp.eq.f32.partialorder %v4030_v15, 0.0 }
 0x2a1   : > { %3168 = vrsqrt.f32 %v4039_v55  ;;  %v1486_v60 = vadd.f32 %v1374_v40, %v4915_v61  ;;  %v1406_v47 = vmin.f32 %v3912_v0, %v1390_v29  ;;  %v1422_v22 = vmax.f32 %v3912_v0, %v1390_v29 }
 0x2a2   : > { %3170 = vpow2.f32 %v3978_v19  ;;  %4917 = vst [vmem:[#allocation18_spill] sm:$0xff] %v4094_v33  ;;  %v1543_v29 = vmul.f32 %v1542_v53, %v3935_v41  ;;  %v1552_v19 = vmul.f32 0.5, %v1551_v13  ;;  %v4110_v2 = vmax.f32 %v1821_v24, 1e-12 }
 0x2a3   : > { %v4083_v26 = vpop.eup %3160  ;;  %v4086_v40 = vmax.f32 %v1486_v60, 1e-12  ;;  %v1438_v54 = vmin.f32 %v3916_v59, %v1422_v22  ;;  %v1454_v0 = vmax.f32 %v3916_v59, %v1422_v22  ;;  %v1723_v55 = vmul.f32 1111.1111, %v1707_v21 }
 0x2a4   : > { %v4091_v5 = vpop.eup %3162  ;;  %v1562_v60 = vmul.f32 %v4083_v26, %v4030_v15  ;;  %v4119_v57 = vmax.f32 %v2157_v23, 1e-12  ;;  %v1533_v24 = vsel %vm1532_vm6, %v3892_v38, %v1531_v37  ;;  %v1545_v21 = vsel %vm1544_vm8, %v3935_v41, %v1543_v29 }
 0x2a5   : > { %4916 = vst [vmem:[#allocation10_spill] sm:$0xff] %v4091_v5  ;;  %v4099_v51 = vpop.eup %3164  ;;  %3172 = vrsqrt.f32 %v4086_v40  ;;  %v4113_v59 = vmin.f32 %v3923_v20, %v1454_v0  ;;  %v4922_v20 = vand.u32 2147483648, %v3877_v27  ;;  %v1547_v23 = vand.u32 2147483648, %v3935_v41 }
 0x2a6   : > { %v4107_v12 = vpop.eup %3166  ;;  %3174 = vrsqrt.f32 %v4078_v1  ;;  %v1350_v53 = vpop.xlane.xlu2 %1349  ;;  %4921 = vst [vmem:[#allocation22_spill] sm:$0xff] %v4119_v57  ;;  %v4923_v27 = vand.u32 2147483648, %v3892_v38  ;;  %v1822_v38 = vadd.f32 %v1406_v47, %v4915_v61  ;;  %v2158_v41 = vadd.f32 %v1438_v54, %v4915_v61 }
 0x2a7   : > { %4918 = vst [vmem:[#allocation19_spill] sm:$0xff] %v4107_v12  ;;  %v4115_v22 = vpop.xlane.xlu0 %322  ;;  %v4117_v39 = vpop.eup %3168  ;;  %v1375_v13 = vmin.f32 %v3926_v58, %v1350_v53  ;;  %v1391_v5 = vmax.f32 %v3926_v58, %v1350_v53  ;;  %3176 = vrsqrt.f32 %v4094_v33  ;;  %v4131_v0 = vsel %vm1522_vm7, %v4922_v20, %v1521_v49  ;;  %v275_v12 = vld [vmem:[%s3448_s6 + $0x40] sm:$0xff] }
 0x2a8   : > { %4919 = vst [vmem:[#allocation20_spill] sm:$0xff] %v4113_v59  ;;  %v1553_v53 = vsub.f32 1.5, %v1552_v19  ;;  %v1563_v59 = vmul.f32 %v4083_v26, %v1562_v60  ;;  %3178 = vrsqrt.f32 %v4110_v2  ;;  %v4147_v49 = vsel %vm1534_vm9, %v4923_v27, %v1533_v24  ;;  %3058 = vmatmul.msk.f32.vlgmr.msra.gmra.mxu2 %vm299_vm1, %v275_v12  ;;  %3075 = vmatmul.msk.f32.vlgmr.msra.gmra.mxu3 %vm299_vm1, %v275_v12 }
 0x2a9   : > { %4920 = vst [vmem:[#allocation21_spill] sm:$0xff] %v4117_v39  ;;  %v4137_v39 = vpop.eup %3170  ;;  %v1407_v58 = vmin.f32 %v3939_v56, %v1391_v5  ;;  %v1423_v37 = vmax.f32 %v3939_v56, %v1391_v5  ;;  %v4150_v20 = vmul.f32 1.442695, %v1723_v55  ;;  %3180 = vrsqrt.f32 %v4119_v57 }
 0x2aa   : > { %v4163_v24 = vsel %vm1546_vm10, %v1547_v23, %v1545_v21  ;;  %v1708_v27 = vsub.f32 0.0, %v3992_v3  ;;  %v1709_v19 = vsub.f32 0.0, %v4030_v15  ;;  %3182 = vpow2.f32 %v4054_v25 }
 0x2ab   : > { %v4152_v31 = vpop.eup %3172  ;;  %v1439_v56 = vmin.f32 %v3950_v62, %v1423_v37  ;;  %v1455_v5 = vmax.f32 %v3950_v62, %v1423_v37  ;;  %v1554_v62 = vmul.f32 %v4032_v9, %v1553_v53  ;;  %v1564_v37 = vmul.f32 0.5, %v1563_v59 }
 0x2ac   : > { %v4158_v60 = vpop.eup %3174  ;;  %v1574_v55 = vmul.f32 %v4152_v31, %v4086_v40  ;;  %v4193_v25 = vmax.f32 %v1822_v38, 1e-12  ;;  %v1724_v34 = vmul.f32 1111.1111, %v1708_v27  ;;  %v4203_v57 = vmax.f32 %v2158_v41, 1e-12 }
 0x2ad   : > { %v1471_v29 = vmin.f32 %v3952_v45, %v1455_v5  ;;  %v4172_v6 = vpop.eup %3176  ;;  %vm1580_vm3 = vcmp.eq.f32.partialorder %v4086_v40, inf  ;;  %vm1582_vm4 = vcmp.eq.f32.partialorder %v4086_v40, 0.0  ;;  %vm1856_vm7 = vcmp.eq.f32.partialorder %v3941_v28, inf }
 0x2ae   : > { %4924 = vst [vmem:[#allocation23_spill] sm:$0xff] %v4172_v6  ;;  %v4175_v47 = vpop.xlane.xlu2 %319  ;;  %v1352_v21 = vpop.xlane.xlu1 %1351  ;;  %v1575_v23 = vmul.f32 %v4152_v31, %v1574_v55  ;;  %vm1858_vm8 = vcmp.eq.f32.partialorder %v3941_v28, 0.0  ;;  %vm1868_vm9 = vcmp.eq.f32.partialorder %v3972_v52, inf  ;;  %vm1870_vm10 = vcmp.eq.f32.partialorder %v3972_v52, 0.0 }
 0x2af   : > { %v1487_v45 = vadd.f32 %v1375_v13, %v4175_v47  ;;  %v4182_v9 = vadd.f32 %v1407_v58, %v4175_v47  ;;  %v4185_v59 = vadd.f32 %v1439_v56, %v4175_v47  ;;  %v4188_v53 = vadd.f32 %v1471_v29, %v4175_v47  ;;  %v539_v54 = vpop.xlane.xlu0 %538  ;;  %v4191_v5 = vpop.eup %3178  ;;  %4927 = vst [vmem:[#allocation26_spill] sm:$0xff] %v4203_v57 }
 0x2b0   : > { %v1376_v55 = vmin.f32 %v3955_v30, %v1352_v21  ;;  %v1392_v13 = vmax.f32 %v3955_v30, %v1352_v21  ;;  %v4198_v36 = vpop.eup %3180  ;;  %v1555_v29 = vmul.f32 %v1554_v62, %v3992_v3  ;;  %v1576_v30 = vmul.f32 0.5, %v1575_v23 }
 0x2b1   : > { %4925 = vst [vmem:[#allocation24_spill] sm:$0xff] %v4188_v53  ;;  %v4200_v56 = vmax.f32 %v1487_v45, 1e-12  ;;  %v1565_v53 = vsub.f32 1.5, %v1564_v37  ;;  %v1710_v62 = vsub.f32 0.0, %v4086_v40  ;;  %v4213_v27 = vpop.eup %3182 }
 0x2b2   : > { %4926 = vst [vmem:[#allocation25_spill] sm:$0xff] %v4198_v36  ;;  %v1408_v6 = vmin.f32 %v3957_v46, %v1392_v13  ;;  %v1424_v38 = vmax.f32 %v3957_v46, %v1392_v13  ;;  %v1488_v33 = vadd.f32 %v1376_v55, %v4115_v22  ;;  %v1725_v37 = vmul.f32 1111.1111, %v1709_v19 }
 0x2b3   : > { %3184 = vrsqrt.f32 %v4200_v56  ;;  %v568_v12 = vmin.f32 %v539_v54, 1e+30  ;;  %v1557_v23 = vsel %vm1556_vm11, %v3992_v3, %v1555_v29  ;;  %v1566_v19 = vmul.f32 %v4083_v26, %v1565_v53 }
 0x2b4   : > { %v1440_v41 = vmin.f32 %v3959_v32, %v1424_v38  ;;  %v1456_v21 = vmax.f32 %v3959_v32, %v1424_v38  ;;  %v4217_v46 = vmax.f32 %v1488_v33, 1e-12  ;;  %v4220_v45 = vadd.f32 %v1408_v6, %v4115_v22 }
 0x2b5   : > { %v1743_v55 = vmul.f32 1.442695, %v1724_v34  ;;  %v1577_v38 = vsub.f32 1.5, %v1576_v30  ;;  %v1726_v57 = vmul.f32 1111.1111, %v1710_v62  ;;  %v4929_v34 = vand.u32 2147483648, %v3992_v3 }
 0x2b6   : > { %v1472_v13 = vmin.f32 %v3964_v4, %v1456_v21  ;;  %3186 = vrsqrt.f32 %v4217_v46  ;;  %v4230_v32 = vadd.f32 %v1440_v41, %v4115_v22  ;;  %v535_v6 = vpop.xlane.xlu1 %534  ;;  %v537_v33 = vpop.xlane.xlu2 %536  ;;  %v1745_v26 = vmul.f32 1.442695, %v1725_v37 }
 0x2b7   : > { %3188 = vrsqrt.f32 %v4193_v25  ;;  %v566_v54 = vmin.f32 %v535_v6, 1e+30  ;;  %v567_v58 = vmin.f32 %v537_v33, 1e+30  ;;  %v4240_v4 = vsel %vm1558_vm12, %v4929_v34, %v1557_v23  ;;  %v545_v62 = vpop.xlane.xlu0 %544 }
 0x2b8   : > { %v4234_v29 = vadd.f32 %v1472_v13, %v4115_v22  ;;  %3190 = vpow2.f32 %v4150_v20  ;;  %v1567_v21 = vmul.f32 %v1566_v19, %v4030_v15  ;;  %v584_v3 = vadd.f32 %v568_v12, %v3836_v10 }
 0x2b9   : > { %v3185_v53 = vpop.eup %3184  ;;  %v582_v30 = vadd.f32 %v566_v54, %v3834_v14  ;;  %v583_v41 = vadd.f32 %v567_v58, %v3838_v18  ;;  %v1578_v23 = vmul.f32 %v4152_v31, %v1577_v38  ;;  %3192 = vpow2.f32 %v1743_v55 }
 0x2ba   : > { %4928 = vst [vmem:[#allocation27_spill] sm:$0xff] %v4234_v29  ;;  %v1586_v6 = vmul.f32 %v3185_v53, %v4200_v56  ;;  %v4252_v33 = vmul.f32 1.442695, %v1726_v57  ;;  %v4256_v58 = vmax.f32 %v4182_v9, 1e-12  ;;  %v1569_v57 = vsel %vm1568_vm14, %v4030_v15, %v1567_v21 }
 0x2bb   : > { %v598_v20 = vmax.f32 %v582_v30, 0.0  ;;  %v599_v37 = vmax.f32 %v583_v41, 0.0  ;;  %v4259_v19 = vmax.f32 %v4185_v59, 1e-12  ;;  %v571_v54 = vmin.f32 %v545_v62, 1e+30 }
 0x2bc   : > { %v3187_v18 = vpop.eup %3186  ;;  %v1587_v10 = vmul.f32 %v3185_v53, %v1586_v6  ;;  %v600_v59 = vmax.f32 %v584_v3, 0.0  ;;  %v1579_v41 = vmul.f32 %v1578_v23, %v4086_v40  ;;  %v1711_v6 = vsub.f32 0.0, %v4200_v56 }
 0x2bd   : > { %4930 = vst [vmem:[#allocation28_spill] sm:$0xff] %v4259_v19  ;;  %v4261_v12 = vpop.eup %3188  ;;  %v631_v31 = vsel %vm630_vm13, %v598_v20, 0.0  ;;  %v632_v55 = vsel %vm630_vm13, %v599_v37, 0.0  ;;  %v1598_v9 = vmul.f32 %v3187_v18, %v4217_v46  ;;  %3194 = vpow2.f32 %v1745_v26 }
 0x2be   : > { %v4270_v38 = vpop.eup %3190  ;;  %v541_v34 = vpop.xlane.xlu1 %540  ;;  %v1588_v62 = vmul.f32 0.5, %v1587_v10  ;;  %v633_v21 = vadd.f32 %v632_v55, %v631_v31  ;;  %v587_v29 = vadd.f32 %v571_v54, %v4915_v61  ;;  %v1712_v36 = vsub.f32 0.0, %v4217_v46 }
 0x2bf   : > { %v543_v30 = vpop.xlane.xlu2 %542  ;;  %v569_v20 = vmin.f32 %v541_v34, 1e+30  ;;  %v1599_v14 = vmul.f32 %v3187_v18, %v1598_v9  ;;  %v4274_v13 = vpop.eup %3192  ;;  %v4931_v23 = vand.u32 2147483648, %v4030_v15  ;;  %v4287_v26 = vmax.f32 %v4220_v45, 1e-12 }
 0x2c0   : > { %v570_v37 = vmin.f32 %v543_v30, 1e+30  ;;  %v1589_v19 = vsub.f32 1.5, %v1588_v62  ;;  %v634_v31 = vsel %vm630_vm13, %v600_v59, 0.0  ;;  %v1581_v54 = vsel %vm1580_vm3, %v4086_v40, %v1579_v41 }
 0x2c1   : > { %v585_v3 = vadd.f32 %v569_v20, %v3869_v42  ;;  %v4284_v10 = vsel %vm1570_vm15, %v4931_v23, %v1569_v57  ;;  %v1600_v9 = vmul.f32 0.5, %v1599_v14  ;;  %vm1592_vm5 = vcmp.eq.f32.partialorder %v4200_v56, inf }
 0x2c2   : > { %v586_v7 = vadd.f32 %v570_v37, %v3845_v16  ;;  %v1727_v42 = vmul.f32 1111.1111, %v1711_v6  ;;  %v1590_v30 = vmul.f32 %v3185_v53, %v1589_v19  ;;  %v4295_v15 = vmax.f32 %v4230_v32, 1e-12 }
 0x2c3   : > { %v601_v55 = vmax.f32 %v585_v3, 0.0  ;;  %v1601_v62 = vsub.f32 1.5, %v1600_v9  ;;  %v603_v14 = vmax.f32 %v587_v29, 0.0  ;;  %v635_v57 = vadd.f32 %v634_v31, %v633_v21  ;;  %v3195_v20 = vpop.eup %3194 }
 0x2c4   : > { %v602_v34 = vmax.f32 %v586_v7, 0.0  ;;  %v1728_v45 = vmul.f32 1111.1111, %v1712_v36  ;;  %vm1594_vm0 = vcmp.eq.f32.partialorder %v4200_v56, 0.0  ;;  %v1595_v41 = vand.u32 2147483648, %v4200_v56 }
 0x2c5   : > { %v636_v59 = vsel %vm630_vm13, %v601_v55, 0.0  ;;  %vm1604_vm2 = vcmp.eq.f32.partialorder %v4217_v46, inf  ;;  %v4932_v53 = vand.u32 2147483648, %v4086_v40  ;;  %v1602_v29 = vmul.f32 %v3187_v18, %v1601_v62 }
 0x2c6   : > { %v637_v6 = vadd.f32 %v636_v59, %v635_v57  ;;  %v547_v37 = vpop.xlane.xlu1 %546  ;;  %v1749_v36 = vmul.f32 1.442695, %v1727_v42  ;;  %v638_v19 = vsel %vm630_vm13, %v602_v34, 0.0  ;;  %v1591_v23 = vmul.f32 %v1590_v30, %v4200_v56 }
 0x2c7   : > { %v549_v7 = vpop.xlane.xlu2 %548  ;;  %v4305_v32 = vsel %vm1582_vm4, %v4932_v53, %v1581_v54  ;;  %v572_v21 = vmin.f32 %v547_v37, 1e+30  ;;  %v640_v9 = vsel %vm630_vm13, %v603_v14, 0.0  ;;  %vm1606_vm6 = vcmp.eq.f32.partialorder %v4217_v46, 0.0 }
 0x2c8   : > { %v573_v3 = vmin.f32 %v549_v7, 1e+30  ;;  %v639_v31 = vadd.f32 %v638_v19, %v637_v6  ;;  %v1607_v55 = vand.u32 2147483648, %v4217_v46  ;;  %v1751_v57 = vmul.f32 1.442695, %v1728_v45 }
 0x2c9   : > { %v588_v40 = vadd.f32 %v572_v21, %v4175_v47  ;;  %3196 = vpow2.f32 %v4252_v33  ;;  %v1851_v18 = vmul.f32 %v3999_v11, %v4048_v35  ;;  %v1603_v42 = vmul.f32 %v1602_v29, %v4217_v46 }
 0x2ca   : > { %v589_v54 = vadd.f32 %v573_v3, %v4115_v22  ;;  %3198 = vpow2.f32 %v1749_v36  ;;  %v1772_v34 = vsub.f32 0.07, %v4240_v4  ;;  %v1773_v30 = vsub.f32 0.07, %v4284_v10 }
 0x2cb   : > { %v604_v62 = vmax.f32 %v588_v40, 0.0  ;;  %v1593_v47 = vsel %vm1592_vm5, %v4200_v56, %v1591_v23  ;;  %v1852_v45 = vmul.f32 0.5, %v1851_v18  ;;  %v641_v22 = vadd.f32 %v640_v9, %v639_v31 }
 0x2cc   : > { %v605_v14 = vmax.f32 %v589_v54, 0.0  ;;  %3200 = vpow2.f32 %v1751_v57  ;;  %v1774_v33 = vsub.f32 0.07, %v4305_v32  ;;  %v1863_v35 = vmul.f32 %v4026_v17, %v4058_v63 }
 0x2cd   : > { %v642_v59 = vsel %vm630_vm13, %v604_v62, 0.0  ;;  %v4933_v4 = vsub.f32 0.07, %v4131_v0  ;;  %v4934_v6 = vsub.f32 0.07, %v4147_v49  ;;  %v1853_v7 = vsub.f32 1.5, %v1852_v45 }
 0x2ce   : > { %v643_v53 = vadd.f32 %v642_v59, %v641_v22  ;;  %v4339_v29 = vsel %vm1594_vm0, %v1595_v41, %v1593_v47  ;;  %v1605_v63 = vsel %vm1604_vm2, %v4217_v46, %v1603_v42  ;;  %v1864_v36 = vmul.f32 0.5, %v1863_v35 }
 0x2cf   : > { %v4330_v10 = vmul.f32 %v4137_v39, %v4933_v4  ;;  %v4335_v37 = vmul.f32 %v4213_v27, %v4934_v6  ;;  %v4344_v0 = vpop.eup %3196  ;;  %v644_v39 = vsel %vm630_vm13, %v605_v14, 0.0  ;;  %v4935_v49 = vsub.f32 0.07, %v4163_v24 }
 0x2d0   : > { %v1854_v19 = vmul.f32 %v3999_v11, %v1853_v7  ;;  %v1874_v56 = vmul.f32 %v4099_v51, %v4024_v50  ;;  %v4355_v41 = vpop.eup %3198  ;;  %v645_v21 = vadd.f32 %v644_v39, %v643_v53  ;;  %v4358_v3 = vmul.f32 %v4274_v13, %v1772_v34 }
 0x2d1   : > { %v4350_v27 = vmul.f32 %v4270_v38, %v4935_v49  ;;  %v1865_v23 = vsub.f32 1.5, %v1864_v36  ;;  %v1886_v9 = vmul.f32 %v4158_v60, %v4078_v1  ;;  %v4364_v24 = vsel %vm1606_vm6, %v1607_v55, %v1605_v63 }
 0x2d2   : > { %v1775_v38 = vsub.f32 0.07, %v4339_v29  ;;  %v4367_v11 = vmul.f32 %v3195_v20, %v1773_v30  ;;  %v1875_v31 = vmul.f32 %v4099_v51, %v1874_v56  ;;  %v4370_v57 = vpop.eup %3200  ;;  %662 = vadd.xlane.f32.xlu0 %v645_v21  ;;  %v1898_v46 = vmul.f32 %v4191_v5, %v4110_v2 }
 0x2d3   : > { %v1866_v13 = vmul.f32 %v4026_v17, %v1865_v23  ;;  %v1887_v40 = vmul.f32 %v4158_v60, %v1886_v9  ;;  %v1855_v55 = vmul.f32 %v1854_v19, %v3941_v28  ;;  %v1859_v20 = vand.u32 2147483648, %v3941_v28 }
 0x2d4   : > { %v1876_v54 = vmul.f32 0.5, %v1875_v31  ;;  %v1899_v34 = vmul.f32 %v4191_v5, %v1898_v46  ;;  %v1871_v17 = vand.u32 2147483648, %v3972_v52  ;;  %v1910_v62 = vmul.f32 %v4261_v12, %v4193_v25 }
 0x2d5   : > { %v1867_v18 = vmul.f32 %v1866_v13, %v3972_v52  ;;  %v1888_v42 = vmul.f32 0.5, %v1887_v40  ;;  %vm1880_vm11 = vcmp.eq.f32.partialorder %v4024_v50, inf  ;;  %vm1882_vm12 = vcmp.eq.f32.partialorder %v4024_v50, 0.0 }
 0x2d6   : > { %v1877_v30 = vsub.f32 1.5, %v1876_v54  ;;  %v1900_v47 = vmul.f32 0.5, %v1899_v34  ;;  %v1857_v45 = vsel %vm1856_vm7, %v3941_v28, %v1855_v55  ;;  %v1883_v35 = vand.u32 2147483648, %v4024_v50 }
 0x2d7   : > { %v1889_v14 = vsub.f32 1.5, %v1888_v42  ;;  %v1911_v59 = vmul.f32 %v4261_v12, %v1910_v62  ;;  %v1869_v4 = vsel %vm1868_vm9, %v3972_v52, %v1867_v18  ;;  %3202 = vrsqrt.f32 %v4256_v58 }
 0x2d8   : > { %v1878_v22 = vmul.f32 %v4099_v51, %v1877_v30  ;;  %v1901_v7 = vsub.f32 1.5, %v1900_v47  ;;  %vm1892_vm14 = vcmp.eq.f32.partialorder %v4078_v1, inf  ;;  %v1895_v63 = vand.u32 2147483648, %v4078_v1 }
 0x2d9   : > { %v1890_v6 = vmul.f32 %v4158_v60, %v1889_v14  ;;  %v1912_v36 = vmul.f32 0.5, %v1911_v59  ;;  %v4403_v51 = vsel %vm1858_vm8, %v1859_v20, %v1857_v45  ;;  %vm1904_vm15 = vcmp.eq.f32.partialorder %v4110_v2, inf }
 0x2da   : > { %v1879_v53 = vmul.f32 %v1878_v22, %v4024_v50  ;;  %v1902_v39 = vmul.f32 %v4191_v5, %v1901_v7  ;;  %3204 = vrsqrt.f32 %v4287_v26  ;;  %v4410_v60 = vsel %vm1870_vm10, %v1871_v17, %v1869_v4 }
 0x2db   : > { %v1891_v49 = vmul.f32 %v1890_v6, %v4078_v1  ;;  %vm1894_vm3 = vcmp.eq.f32.partialorder %v4078_v1, 0.0  ;;  %v1907_v19 = vand.u32 2147483648, %v4110_v2  ;;  %v1913_v56 = vsub.f32 1.5, %v1912_v36 }
 0x2dc   : > { %v1881_v21 = vsel %vm1880_vm11, %v4024_v50, %v1879_v53  ;;  %v1903_v5 = vmul.f32 %v1902_v39, %v4110_v2  ;;  %vm1916_vm4 = vcmp.eq.f32.partialorder %v4193_v25, inf  ;;  %v1919_v23 = vand.u32 2147483648, %v4193_v25 }
 0x2dd   : > { %v2041_v9 = vsub.f32 0.0, %v3941_v28  ;;  %vm1906_vm5 = vcmp.eq.f32.partialorder %v4110_v2, 0.0  ;;  %v1914_v31 = vmul.f32 %v4261_v12, %v1913_v56  ;;  %v1931_v13 = vand.u32 2147483648, %v4256_v58  ;;  %v3203_v55 = vpop.eup %3202 }
 0x2de   : > { %v2042_v40 = vsub.f32 0.0, %v3972_v52  ;;  %v2043_v46 = vsub.f32 0.0, %v4024_v50  ;;  %v1943_v20 = vand.u32 2147483648, %v4287_v26  ;;  %v2044_v54 = vsub.f32 0.0, %v4078_v1 }
 0x2df   : > { %v2045_v18 = vsub.f32 0.0, %v4110_v2  ;;  %v2046_v42 = vsub.f32 0.0, %v4193_v25  ;;  %v4433_v28 = vsel %vm1882_vm12, %v1883_v35, %v1881_v21  ;;  %v1893_v12 = vsel %vm1892_vm14, %v4078_v1, %v1891_v49 }
 0x2e0   : > { %vm1918_vm0 = vcmp.eq.f32.partialorder %v4193_v25, 0.0  ;;  %v1922_v52 = vmul.f32 %v3203_v55, %v4256_v58  ;;  %v2047_v34 = vsub.f32 0.0, %v4256_v58  ;;  %v3205_v17 = vpop.eup %3204  ;;  %v1905_v30 = vsel %vm1904_vm15, %v4110_v2, %v1903_v5 }
 0x2e1   : > { %v2048_v62 = vsub.f32 0.0, %v4287_v26  ;;  %v2057_v50 = vmul.f32 1111.1111, %v2041_v9  ;;  %v2058_v14 = vmul.f32 1111.1111, %v2042_v40  ;;  %v1915_v47 = vmul.f32 %v1914_v31, %v4193_v25 }
 0x2e2   : > { %v1923_v45 = vmul.f32 %v3203_v55, %v1922_v52  ;;  %v1934_v22 = vmul.f32 %v3205_v17, %v4287_v26  ;;  %v2059_v35 = vmul.f32 1111.1111, %v2043_v46  ;;  %vm1928_vm2 = vcmp.eq.f32.partialorder %v4256_v58, inf }
 0x2e3   : > { %v2060_v59 = vmul.f32 1111.1111, %v2044_v54  ;;  %v2061_v4 = vmul.f32 1111.1111, %v2045_v18  ;;  %v2062_v6 = vmul.f32 1111.1111, %v2046_v42  ;;  %v2186_v7 = vmul.f32 %v4007_v44, %v3943_v48 }
 0x2e4   : > { %v1924_v53 = vmul.f32 0.5, %v1923_v45  ;;  %vm1930_vm6 = vcmp.eq.f32.partialorder %v4256_v58, 0.0  ;;  %v1935_v36 = vmul.f32 %v3205_v17, %v1934_v22  ;;  %v2063_v39 = vmul.f32 1111.1111, %v2047_v34 }
 0x2e5   : > { %v2064_v49 = vmul.f32 1111.1111, %v2048_v62  ;;  %v1896_v56 = vsel %vm1894_vm3, %v1895_v63, %v1893_v12  ;;  %vm1940_vm7 = vcmp.eq.f32.partialorder %v4287_v26, inf  ;;  %v2073_v21 = vmul.f32 1.442695, %v2057_v50 }
 0x2e6   : > { %v2075_v5 = vmul.f32 1.442695, %v2058_v14  ;;  %v2077_v9 = vmul.f32 1.442695, %v2059_v35  ;;  %v1917_v31 = vsel %vm1916_vm4, %v4193_v25, %v1915_v47  ;;  %v1925_v40 = vsub.f32 1.5, %v1924_v53 }
 0x2e7   : > { %v1936_v46 = vmul.f32 0.5, %v1935_v36  ;;  %vm1942_vm8 = vcmp.eq.f32.partialorder %v4287_v26, 0.0  ;;  %v2079_v54 = vmul.f32 1.442695, %v2060_v59  ;;  %v1908_v18 = vsel %vm1906_vm5, %v1907_v19, %v1905_v30 }
 0x2e8   : > { %3206 = vpow2.f32 %v2073_v21  ;;  %v2081_v1 = vmul.f32 1.442695, %v2061_v4  ;;  %v2187_v63 = vmul.f32 %v4007_v44, %v2186_v7  ;;  %v1926_v42 = vmul.f32 %v3203_v55, %v1925_v40 }
 0x2e9   : > { %v1937_v12 = vsub.f32 1.5, %v1936_v46  ;;  %3208 = vpow2.f32 %v2075_v5  ;;  %v2083_v52 = vmul.f32 1.442695, %v2062_v6  ;;  %v1920_v34 = vsel %vm1918_vm0, %v1919_v23, %v1917_v31 }
 0x2ea   : > { %3210 = vpow2.f32 %v2077_v9  ;;  %v2085_v62 = vmul.f32 1.442695, %v2063_v39  ;;  %v2087_v50 = vmul.f32 1.442695, %v2064_v49  ;;  %v1927_v14 = vmul.f32 %v1926_v42, %v4256_v58 }
 0x2eb   : > { %v1938_v47 = vmul.f32 %v3205_v17, %v1937_v12  ;;  %3212 = vpow2.f32 %v2079_v54  ;;  %v2105_v2 = vsub.f32 0.07, %v4403_v51  ;;  %v2106_v19 = vsub.f32 0.07, %v4410_v60  ;;  %v4937_v12 = vld [vmem:[#allocation19_spill] sm:$0xff] }
 0x2ec   : > { %3214 = vpow2.f32 %v2081_v1  ;;  %v2107_v55 = vsub.f32 0.07, %v4433_v28  ;;  %v2188_v30 = vmul.f32 0.5, %v2187_v63  ;;  %v1929_v25 = vsel %vm1928_vm2, %v4256_v58, %v1927_v14  ;;  %v4938_v14 = vld [vmem:[#allocation18_spill] sm:$0xff] }
 0x2ed   : > { %v1939_v23 = vmul.f32 %v1938_v47, %v4287_v26  ;;  %3216 = vpow2.f32 %v2083_v52  ;;  %v2108_v45 = vsub.f32 0.07, %v1896_v56  ;;  %v1932_v51 = vsel %vm1930_vm6, %v1931_v13, %v1929_v25  ;;  %v4939_v47 = vld [vmem:[#allocation23_spill] sm:$0xff] }
 0x2ee   : > { %v3207_v22 = vpop.eup %3206  ;;  %3218 = vpow2.f32 %v2085_v62  ;;  %v2109_v17 = vsub.f32 0.07, %v1908_v18  ;;  %v2189_v60 = vsub.f32 1.5, %v2188_v30  ;;  %v2110_v59 = vsub.f32 0.07, %v1920_v34  ;;  %v4941_v30 = vld [vmem:[#allocation25_spill] sm:$0xff] }
 0x2ef   : > { %v3209_v35 = vpop.eup %3208  ;;  %v1941_v28 = vsel %vm1940_vm7, %v4287_v26, %v1939_v23  ;;  %3220 = vpow2.f32 %v2087_v50  ;;  %v2121_v4 = vmul.f32 %v3207_v22, %v2105_v2  ;;  %v2198_v13 = vmul.f32 %v4076_v8, %v4009_v43 }
 0x2f0   : > { %v3211_v6 = vpop.eup %3210  ;;  %v1944_v7 = vsel %vm1942_vm8, %v1943_v20, %v1941_v28  ;;  %v2122_v53 = vmul.f32 %v3209_v35, %v2106_v19  ;;  %v2190_v58 = vmul.f32 %v4007_v44, %v2189_v60  ;;  %v1776_v39 = vsub.f32 0.07, %v4364_v24  ;;  %v4942_v60 = vld [vmem:[#allocation26_spill] sm:$0xff] }
 0x2f1   : > { %v3213_v36 = vpop.eup %3212  ;;  %v2111_v49 = vsub.f32 0.07, %v1932_v51  ;;  %v2123_v56 = vmul.f32 %v3211_v6, %v2107_v55  ;;  %v4487_v21 = vadd.f32 %v2121_v4, %v4330_v10  ;;  %v2112_v9 = vsub.f32 0.07, %v1944_v7  ;;  %v4940_v55 = vld [vmem:[#allocation22_spill] sm:$0xff] }
 0x2f2   : > { %v3215_v5 = vpop.eup %3214  ;;  %v2124_v31 = vmul.f32 %v3213_v36, %v2108_v45  ;;  %v4490_v26 = vadd.f32 %v2122_v53, %v4335_v37  ;;  %v2199_v20 = vmul.f32 %v4076_v8, %v2198_v13  ;;  %v1791_v40 = vmul.f32 %v4355_v41, %v1775_v38 }
 0x2f3   : > { %v3217_v44 = vpop.eup %3216  ;;  %v2125_v46 = vmul.f32 %v3215_v5, %v2109_v17  ;;  %v4497_v24 = vadd.f32 %v2123_v56, %v4350_v27  ;;  %v2191_v10 = vmul.f32 %v2190_v58, %v3943_v48  ;;  %v1790_v18 = vmul.f32 %v4344_v0, %v1774_v33  ;;  %v4936_v27 = vld [vmem:[#allocation14_spill] sm:$0xff]  ;;  %v4943_v58 = vld [vmem:[#allocation28_spill] sm:$0xff] }
 0x2f4   : > { %v3219_v54 = vpop.eup %3218  ;;  %v2126_v37 = vmul.f32 %v3217_v44, %v2110_v59  ;;  %v4504_v1 = vadd.f32 %v2124_v31, %v4358_v3  ;;  %v2200_v63 = vmul.f32 0.5, %v2199_v20  ;;  %v1792_v29 = vmul.f32 %v4370_v57, %v1776_v39 }
 0x2f5   : > { %v3221_v42 = vpop.eup %3220  ;;  %v2127_v41 = vmul.f32 %v3219_v54, %v2111_v49  ;;  %v4508_v38 = vadd.f32 %v2125_v46, %v4367_v11  ;;  %v2210_v52 = vmul.f32 %v4937_v12, %v4936_v27  ;;  %vm2192_vm9 = vcmp.eq.f32.partialorder %v3943_v48, inf }
 0x2f6   : > { %v2128_v34 = vmul.f32 %v3221_v42, %v2112_v9  ;;  %v4512_v62 = vadd.f32 %v2126_v37, %v1790_v18  ;;  %v2201_v32 = vsub.f32 1.5, %v2200_v63  ;;  %v2193_v0 = vsel %vm2192_vm9, %v3943_v48, %v2191_v10 }
 0x2f7   : > { %v4515_v33 = vadd.f32 %v2127_v41, %v1791_v40  ;;  %vm2194_vm10 = vcmp.eq.f32.partialorder %v3943_v48, 0.0  ;;  %v2211_v3 = vmul.f32 %v4937_v12, %v2210_v52  ;;  %v2195_v11 = vand.u32 2147483648, %v3943_v48 }
 0x2f8   : > { %v4520_v57 = vadd.f32 %v2128_v34, %v1792_v29  ;;  %v2202_v50 = vmul.f32 %v4076_v8, %v2201_v32  ;;  %v2222_v2 = vmul.f32 %v4939_v47, %v4938_v14  ;;  %vm2204_vm11 = vcmp.eq.f32.partialorder %v4009_v43, inf }
 0x2f9   : > { %vm2206_vm12 = vcmp.eq.f32.partialorder %v4009_v43, 0.0  ;;  %v2212_v19 = vmul.f32 0.5, %v2211_v3  ;;  %v2234_v25 = vmul.f32 %v4941_v30, %v4940_v55  ;;  %v4530_v23 = vsel %vm2194_vm10, %v2195_v11, %v2193_v0 }
 0x2fa   : > { %v2203_v45 = vmul.f32 %v2202_v50, %v4009_v43  ;;  %v2207_v22 = vand.u32 2147483648, %v4009_v43  ;;  %v2223_v51 = vmul.f32 %v4939_v47, %v2222_v2  ;;  %vm2216_vm14 = vcmp.eq.f32.partialorder %v4936_v27, inf }
 0x2fb   : > { %v2213_v8 = vsub.f32 1.5, %v2212_v19  ;;  %v2235_v17 = vmul.f32 %v4941_v30, %v2234_v25  ;;  %3222 = vrsqrt.f32 %v4942_v60  ;;  %vm2218_vm15 = vcmp.eq.f32.partialorder %v4936_v27, 0.0 }
 0x2fc   : > { %v2219_v35 = vand.u32 2147483648, %v4936_v27  ;;  %v2224_v28 = vmul.f32 0.5, %v2223_v51  ;;  %vm2228_vm3 = vcmp.eq.f32.partialorder %v4938_v14, inf  ;;  %v2205_v59 = vsel %vm2204_vm11, %v4009_v43, %v2203_v45 }
 0x2fd   : > { %v2214_v4 = vmul.f32 %v4937_v12, %v2213_v8  ;;  %vm2230_vm4 = vcmp.eq.f32.partialorder %v4938_v14, 0.0  ;;  %v2236_v6 = vmul.f32 0.5, %v2235_v17  ;;  %v2231_v53 = vand.u32 2147483648, %v4938_v14 }
 0x2fe   : > { %v2225_v7 = vsub.f32 1.5, %v2224_v28  ;;  %vm2240_vm5 = vcmp.eq.f32.partialorder %v4940_v55, inf  ;;  %3224 = vrsqrt.f32 %v4943_v58  ;;  %v2243_v39 = vand.u32 2147483648, %v4940_v55 }
 0x2ff   : > { %v2215_v13 = vmul.f32 %v2214_v4, %v4936_v27  ;;  %v2237_v36 = vsub.f32 1.5, %v2236_v6  ;;  %3226 = vrsqrt.f32 %v4295_v15  ;;  %v4554_v49 = vsel %vm2206_vm12, %v2207_v22, %v2205_v59 }
 0x300   : > { %v2226_v56 = vmul.f32 %v4939_v47, %v2225_v7  ;;  %vm2242_vm0 = vcmp.eq.f32.partialorder %v4940_v55, 0.0  ;;  %v2255_v5 = vand.u32 2147483648, %v4942_v60  ;;  %v2267_v9 = vand.u32 2147483648, %v4943_v58 }
 0x301   : > { %v3223_v31 = vpop.eup %3222  ;;  %v2217_v20 = vsel %vm2216_vm14, %v4936_v27, %v2215_v13  ;;  %v2238_v44 = vmul.f32 %v4941_v30, %v2237_v36  ;;  %v2279_v40 = vand.u32 2147483648, %v4295_v15  ;;  %v2377_v46 = vsub.f32 0.0, %v3943_v48 }
 0x302   : > { %v4568_v10 = vsel %vm2218_vm15, %v2219_v35, %v2217_v20  ;;  %v2227_v54 = vmul.f32 %v2226_v56, %v4938_v14  ;;  %v2246_v18 = vmul.f32 %v3223_v31, %v4942_v60  ;;  %v2378_v37 = vsub.f32 0.0, %v4009_v43 }
 0x303   : > { %v2239_v63 = vmul.f32 %v2238_v44, %v4940_v55  ;;  %v2379_v42 = vsub.f32 0.0, %v4936_v27  ;;  %v2380_v29 = vsub.f32 0.0, %v4938_v14  ;;  %v2381_v41 = vsub.f32 0.0, %v4940_v55 }
 0x304   : > { %v3225_v12 = vpop.eup %3224  ;;  %v2229_v48 = vsel %vm2228_vm3, %v4938_v14, %v2227_v54  ;;  %v2247_v52 = vmul.f32 %v3223_v31, %v2246_v18  ;;  %v2382_v34 = vsub.f32 0.0, %v4942_v60  ;;  %v2383_v32 = vsub.f32 0.0, %v4943_v58 }
 0x305   : > { %v3227_v0 = vpop.eup %3226  ;;  %v4584_v43 = vsel %vm2230_vm4, %v2231_v53, %v2229_v48  ;;  %vm2252_vm2 = vcmp.eq.f32.partialorder %v4942_v60, inf  ;;  %v2258_v27 = vmul.f32 %v3225_v12, %v4943_v58  ;;  %v2384_v3 = vsub.f32 0.0, %v4295_v15  ;;  %v4945_v48 = vld [vmem:[#allocation17_spill] sm:$0xff] }
 0x306   : > { %v2393_v11 = vmul.f32 1111.1111, %v2377_v46  ;;  %v2241_v50 = vsel %vm2240_vm5, %v4940_v55, %v2239_v63  ;;  %v2248_v47 = vmul.f32 0.5, %v2247_v52  ;;  %v2270_v2 = vmul.f32 %v3227_v0, %v4295_v15 }
 0x307   : > { %v2394_v19 = vmul.f32 1111.1111, %v2378_v37  ;;  %vm2254_vm6 = vcmp.eq.f32.partialorder %v4942_v60, 0.0  ;;  %v2259_v14 = vmul.f32 %v3225_v12, %v2258_v27  ;;  %v2395_v30 = vmul.f32 1111.1111, %v2379_v42 }
 0x308   : > { %v2396_v25 = vmul.f32 1111.1111, %v2380_v29  ;;  %v2397_v45 = vmul.f32 1111.1111, %v2381_v41  ;;  %v2249_v22 = vsub.f32 1.5, %v2248_v47  ;;  %vm2264_vm7 = vcmp.eq.f32.partialorder %v4943_v58, inf }
 0x309   : > { %v2271_v51 = vmul.f32 %v3227_v0, %v2270_v2  ;;  %v2398_v8 = vmul.f32 1111.1111, %v2382_v34  ;;  %v2399_v17 = vmul.f32 1111.1111, %v2383_v32  ;;  %v2244_v35 = vsel %vm2242_vm0, %v2243_v39, %v2241_v50  ;;  %v4944_v41 = vld [vmem:[#allocation11_spill] sm:$0xff] }
 0x30a   : > { %v2260_v28 = vmul.f32 0.5, %v2259_v14  ;;  %vm2266_vm8 = vcmp.eq.f32.partialorder %v4943_v58, 0.0  ;;  %vm2276_vm9 = vcmp.eq.f32.partialorder %v4295_v15, inf  ;;  %v2400_v59 = vmul.f32 1111.1111, %v2384_v3 }
 0x30b   : > { %v2409_v4 = vmul.f32 1.442695, %v2393_v11  ;;  %v2250_v6 = vmul.f32 %v3223_v31, %v2249_v22  ;;  %v2272_v7 = vmul.f32 0.5, %v2271_v51  ;;  %vm2278_vm10 = vcmp.eq.f32.partialorder %v4295_v15, 0.0 }
 0x30c   : > { %v2411_v53 = vmul.f32 1.442695, %v2394_v19  ;;  %v2413_v13 = vmul.f32 1.442695, %v2395_v30  ;;  %v2261_v36 = vsub.f32 1.5, %v2260_v28  ;;  %v2522_v52 = vmul.f32 %v4945_v48, %v4944_v41  ;;  %v4947_v28 = vld [vmem:[#allocation13_spill] sm:$0xff] }
 0x30d   : > { %3228 = vpow2.f32 %v2409_v4  ;;  %v2415_v56 = vmul.f32 1.442695, %v2396_v25  ;;  %v2417_v20 = vmul.f32 1.442695, %v2397_v45  ;;  %v2251_v55 = vmul.f32 %v2250_v6, %v4942_v60  ;;  %v4949_v6 = vld [vmem:[#allocation20_spill] sm:$0xff] }
 0x30e   : > { %v2273_v39 = vsub.f32 1.5, %v2272_v7  ;;  %3230 = vpow2.f32 %v2411_v53  ;;  %v2419_v44 = vmul.f32 1.442695, %v2398_v8  ;;  %v2262_v46 = vmul.f32 %v3225_v12, %v2261_v36  ;;  %v4950_v36 = vld [vmem:[#allocation12_spill] sm:$0xff] }
 0x30f   : > { %3232 = vpow2.f32 %v2413_v13  ;;  %v2421_v54 = vmul.f32 1.442695, %v2399_v17  ;;  %v2423_v18 = vmul.f32 1.442695, %v2400_v59  ;;  %v2253_v31 = vsel %vm2252_vm2, %v4942_v60, %v2251_v55  ;;  %v4948_v59 = vld [vmem:[#allocation10_spill] sm:$0xff] }
 0x310   : > { %v2274_v37 = vmul.f32 %v3227_v0, %v2273_v39  ;;  %3234 = vpow2.f32 %v2415_v56  ;;  %v2441_v63 = vsub.f32 0.07, %v4530_v23  ;;  %v2263_v42 = vmul.f32 %v2262_v46, %v4943_v58 }
 0x311   : > { %3236 = vpow2.f32 %v2417_v20  ;;  %v2442_v29 = vsub.f32 0.07, %v4554_v49  ;;  %v2256_v12 = vsel %vm2254_vm6, %v2255_v5, %v2253_v31  ;;  %v2443_v32 = vsub.f32 0.07, %v4568_v10  ;;  %v4952_v31 = vld [vmem:[#allocation21_spill] sm:$0xff] }
 0x312   : > { %v2275_v34 = vmul.f32 %v2274_v37, %v4295_v15  ;;  %3238 = vpow2.f32 %v2419_v44  ;;  %v2265_v23 = vsel %vm2264_vm7, %v4943_v58, %v2263_v42  ;;  %v2444_v49 = vsub.f32 0.07, %v4584_v43  ;;  %v4946_v58 = vld [vmem:[#allocation16_spill] sm:$0xff] }
 0x313   : > { %v3229_v0 = vpop.eup %3228  ;;  %3240 = vpow2.f32 %v2421_v54  ;;  %v2445_v27 = vsub.f32 0.07, %v2244_v35  ;;  %v2268_v60 = vsel %vm2266_vm8, %v2267_v9, %v2265_v23  ;;  %v2446_v43 = vsub.f32 0.07, %v2256_v12 }
 0x314   : > { %v3231_v3 = vpop.eup %3230  ;;  %v2277_v5 = vsel %vm2276_vm9, %v4295_v15, %v2275_v34  ;;  %3242 = vpow2.f32 %v2423_v18  ;;  %v2457_v10 = vmul.f32 %v3229_v0, %v2441_v63  ;;  %v2523_v2 = vmul.f32 %v4945_v48, %v2522_v52  ;;  %v4951_v18 = vld [vmem:[#allocation15_spill] sm:$0xff] }
 0x315   : > { %v3233_v11 = vpop.eup %3232  ;;  %v2280_v50 = vsel %vm2278_vm10, %v2279_v40, %v2277_v5  ;;  %v2458_v47 = vmul.f32 %v3231_v3, %v2442_v29  ;;  %v2493_v9 = vadd.f32 %v4946_v58, %v3845_v16  ;;  %v2447_v14 = vsub.f32 0.07, %v2268_v60  ;;  %v4953_v29 = vld [vmem:[#allocation24_spill] sm:$0xff] }
 0x316   : > { %v3235_v19 = vpop.eup %3234  ;;  %v2459_v30 = vmul.f32 %v3233_v11, %v2443_v32  ;;  %v4634_v25 = vadd.f32 %v2457_v10, %v4487_v21  ;;  %v2448_v22 = vsub.f32 0.07, %v2280_v50  ;;  %v2524_v15 = vmul.f32 0.5, %v2523_v2 }
 0x317   : > { %v3237_v45 = vpop.eup %3236  ;;  %v2460_v51 = vmul.f32 %v3235_v19, %v2444_v49  ;;  %v4637_v8 = vadd.f32 %v2458_v47, %v4490_v26  ;;  %v2534_v16 = vmul.f32 %v4948_v59, %v4947_v28  ;;  %v2494_v21 = vadd.f32 %v4949_v6, %v4915_v61 }
 0x318   : > { %v3239_v40 = vpop.eup %3238  ;;  %v2461_v17 = vmul.f32 %v3237_v45, %v2445_v27  ;;  %v4640_v35 = vadd.f32 %v2459_v30, %v4497_v24  ;;  %v2525_v13 = vsub.f32 1.5, %v2524_v15  ;;  %v4650_v56 = vmax.f32 %v4950_v36, 1e-12 }
 0x319   : > { %v3241_v4 = vpop.eup %3240  ;;  %v2462_v7 = vmul.f32 %v3239_v40, %v2446_v43  ;;  %v4647_v53 = vadd.f32 %v2460_v51, %v4504_v1  ;;  %v2535_v55 = vmul.f32 %v4948_v59, %v2534_v16  ;;  %v4656_v39 = vmax.f32 %v2493_v9, 1e-12 }
 0x31a   : > { %v3243_v26 = vpop.eup %3242  ;;  %v2463_v20 = vmul.f32 %v3241_v4, %v2447_v14  ;;  %v4653_v24 = vadd.f32 %v2461_v17, %v4508_v38  ;;  %v2526_v1 = vmul.f32 %v4945_v48, %v2525_v13  ;;  %v2546_v37 = vmul.f32 %v4952_v31, %v4951_v18 }
 0x31b   : > { %v2464_v44 = vmul.f32 %v3243_v26, %v2448_v22  ;;  %v4659_v61 = vadd.f32 %v2462_v7, %v4512_v62  ;;  %v2536_v54 = vmul.f32 0.5, %v2535_v55  ;;  %v4667_v63 = vmax.f32 %v2494_v21, 1e-12 }
 0x31c   : > { %v4663_v46 = vadd.f32 %v2463_v20, %v4515_v33  ;;  %v2527_v42 = vmul.f32 %v2526_v1, %v4944_v41  ;;  %v4674_v52 = vmax.f32 %v4953_v29, 1e-12  ;;  %v2547_v48 = vmul.f32 %v4952_v31, %v2546_v37  ;;  %v4954_v33 = vld [vmem:[#allocation27_spill] sm:$0xff] }
 0x31d   : > { %v4670_v38 = vadd.f32 %v2464_v44, %v4520_v57  ;;  %v2537_v62 = vsub.f32 1.5, %v2536_v54  ;;  %3244 = vrsqrt.f32 %v4650_v56  ;;  %v4679_v12 = vmax.f32 %v4954_v33, 1e-12 }
 0x31e   : > { %vm2528_vm11 = vcmp.eq.f32.partialorder %v4944_v41, inf  ;;  %vm2530_vm12 = vcmp.eq.f32.partialorder %v4944_v41, 0.0  ;;  %3246 = vrsqrt.f32 %v4656_v39  ;;  %v2531_v34 = vand.u32 2147483648, %v4944_v41 }
 0x31f   : > { %v2529_v57 = vsel %vm2528_vm11, %v4944_v41, %v2527_v42  ;;  %v2538_v32 = vmul.f32 %v4948_v59, %v2537_v62  ;;  %v2548_v0 = vmul.f32 0.5, %v2547_v48  ;;  %vm2540_vm14 = vcmp.eq.f32.partialorder %v4947_v28, inf }
 0x320   : > { %vm2542_vm15 = vcmp.eq.f32.partialorder %v4947_v28, 0.0  ;;  %v2543_v23 = vand.u32 2147483648, %v4947_v28  ;;  %3248 = vrsqrt.f32 %v4667_v63  ;;  %vm2552_vm3 = vcmp.eq.f32.partialorder %v4951_v18, inf }
 0x321   : > { %v2539_v49 = vmul.f32 %v2538_v32, %v4947_v28  ;;  %v2549_v27 = vsub.f32 1.5, %v2548_v0  ;;  %vm2554_vm4 = vcmp.eq.f32.partialorder %v4951_v18, 0.0  ;;  %v4694_v3 = vsel %vm2530_vm12, %v2531_v34, %v2529_v57  ;;  %v276_v0 = vld [vmem:[%s3448_s6 + $0x48] sm:$0xff] }
 0x322   : > { %v2555_v60 = vand.u32 2147483648, %v4951_v18  ;;  %v2567_v5 = vand.u32 2147483648, %v4650_v56  ;;  %3250 = vrsqrt.f32 %v4674_v52  ;;  %v2579_v43 = vand.u32 2147483648, %v4656_v39  ;;  %3059 = vmatmul.msk.f32.gmra.mxu2 %vm299_vm1, %v276_v0  ;;  %3076 = vmatmul.msk.f32.gmra.mxu3 %vm299_vm1, %v276_v0  ;;  %v278_v0 = vld [vmem:[%s3448_s6 + $0x58] sm:$0xff] }
 0x323   : > { %v3245_v10 = vpop.eup %3244  ;;  %v2541_v11 = vsel %vm2540_vm14, %v4947_v28, %v2539_v49  ;;  %v2550_v50 = vmul.f32 %v4952_v31, %v2549_v27  ;;  %3252 = vrsqrt.f32 %v4679_v12  ;;  %v2591_v58 = vand.u32 2147483648, %v4667_v63 }
 0x324   : > { %v3247_v47 = vpop.eup %3246  ;;  %v4705_v2 = vsel %vm2542_vm15, %v2543_v23, %v2541_v11  ;;  %v2558_v19 = vmul.f32 %v3245_v10, %v4650_v56  ;;  %v2603_v9 = vand.u32 2147483648, %v4674_v52  ;;  %v2615_v45 = vand.u32 2147483648, %v4679_v12 }
 0x325   : > { %v2551_v14 = vmul.f32 %v2550_v50, %v4951_v18  ;;  %v2570_v30 = vmul.f32 %v3247_v47, %v4656_v39  ;;  %v2713_v22 = vsub.f32 0.0, %v4944_v41  ;;  %v2714_v40 = vsub.f32 0.0, %v4947_v28 }
 0x326   : > { %v3249_v51 = vpop.eup %3248  ;;  %v2559_v15 = vmul.f32 %v3245_v10, %v2558_v19  ;;  %v2715_v17 = vsub.f32 0.0, %v4951_v18  ;;  %v2716_v59 = vsub.f32 0.0, %v4650_v56  ;;  %vm2564_vm5 = vcmp.eq.f32.partialorder %v4650_v56, inf }
 0x327   : > { %v2553_v16 = vsel %vm2552_vm3, %v4951_v18, %v2551_v14  ;;  %v2571_v4 = vmul.f32 %v3247_v47, %v2570_v30  ;;  %v2582_v6 = vmul.f32 %v3249_v51, %v4667_v63  ;;  %v2717_v21 = vsub.f32 0.0, %v4656_v39 }
 0x328   : > { %v3251_v41 = vpop.eup %3250  ;;  %v4725_v7 = vsel %vm2554_vm4, %v2555_v60, %v2553_v16  ;;  %v2560_v28 = vmul.f32 0.5, %v2559_v15  ;;  %vm2576_vm0 = vcmp.eq.f32.partialorder %v4656_v39, inf  ;;  %v2718_v13 = vsub.f32 0.0, %v4667_v63 }
 0x329   : > { %v2719_v26 = vsub.f32 0.0, %v4674_v52  ;;  %v3253_v36 = vpop.eup %3252  ;;  %vm2566_vm2 = vcmp.eq.f32.partialorder %v4650_v56, 0.0  ;;  %v2572_v20 = vmul.f32 0.5, %v2571_v4  ;;  %v2583_v55 = vmul.f32 %v3249_v51, %v2582_v6 }
 0x32a   : > { %v2594_v44 = vmul.f32 %v3251_v41, %v4674_v52  ;;  %v2720_v1 = vsub.f32 0.0, %v4679_v12  ;;  %v2561_v54 = vsub.f32 1.5, %v2560_v28  ;;  %vm2588_vm6 = vcmp.eq.f32.partialorder %v4667_v63, inf }
 0x32b   : > { %v2606_v18 = vmul.f32 %v3253_v36, %v4679_v12  ;;  %v2729_v31 = vmul.f32 1111.1111, %v2713_v22  ;;  %v2730_v37 = vmul.f32 1111.1111, %v2714_v40  ;;  %v2573_v42 = vsub.f32 1.5, %v2572_v20 }
 0x32c   : > { %vm2578_vm7 = vcmp.eq.f32.partialorder %v4656_v39, 0.0  ;;  %v2584_v29 = vmul.f32 0.5, %v2583_v55  ;;  %v2595_v62 = vmul.f32 %v3251_v41, %v2594_v44  ;;  %v2731_v48 = vmul.f32 1111.1111, %v2715_v17 }
 0x32d   : > { %v2562_v33 = vmul.f32 %v3245_v10, %v2561_v54  ;;  %vm2600_vm8 = vcmp.eq.f32.partialorder %v4674_v52, inf  ;;  %v2607_v57 = vmul.f32 %v3253_v36, %v2606_v18  ;;  %v2732_v34 = vmul.f32 1111.1111, %v2716_v59 }
 0x32e   : > { %v2733_v32 = vmul.f32 1111.1111, %v2717_v21  ;;  %v2574_v23 = vmul.f32 %v3247_v47, %v2573_v42  ;;  %v2585_v49 = vsub.f32 1.5, %v2584_v29  ;;  %vm2590_vm9 = vcmp.eq.f32.partialorder %v4667_v63, 0.0 }
 0x32f   : > { %v2596_v27 = vmul.f32 0.5, %v2595_v62  ;;  %vm2612_vm10 = vcmp.eq.f32.partialorder %v4679_v12, inf  ;;  %v2734_v60 = vmul.f32 1111.1111, %v2718_v13  ;;  %v2563_v10 = vmul.f32 %v2562_v33, %v4650_v56  ;;  %v277_v13 = vld [vmem:[%s3448_s6 + $0x50] sm:$0xff] }
 0x330   : > { %vm2602_vm11 = vcmp.eq.f32.partialorder %v4674_v52, 0.0  ;;  %v2608_v11 = vmul.f32 0.5, %v2607_v57  ;;  %v2735_v50 = vmul.f32 1111.1111, %v2719_v26  ;;  %v2745_v19 = vmul.f32 1.442695, %v2729_v31  ;;  %3060 = vmatmul.msk.f32.gmra.mxu2 %vm299_vm1, %v277_v13  ;;  %3077 = vmatmul.msk.f32.gmra.mxu3 %vm299_vm1, %v277_v13  ;;  %v718_v57 = vpop.f32.mrf.mxu3 }
 0x331   : > { %v2575_v47 = vmul.f32 %v2574_v23, %v4656_v39  ;;  %v2586_v14 = vmul.f32 %v3249_v51, %v2585_v49  ;;  %v2597_v30 = vsub.f32 1.5, %v2596_v27  ;;  %vm2614_vm12 = vcmp.eq.f32.partialorder %v4679_v12, 0.0 }
 0x332   : > { %v2747_v22 = vmul.f32 1.442695, %v2730_v37  ;;  %v2565_v15 = vsel %vm2564_vm5, %v4650_v56, %v2563_v10  ;;  %v2609_v40 = vsub.f32 1.5, %v2608_v11  ;;  %v2736_v17 = vmul.f32 1111.1111, %v2720_v1 }
 0x333   : > { %v2749_v59 = vmul.f32 1.442695, %v2731_v48  ;;  %v2577_v16 = vsel %vm2576_vm0, %v4656_v39, %v2575_v47  ;;  %v2587_v4 = vmul.f32 %v2586_v14, %v4667_v63  ;;  %v2598_v6 = vmul.f32 %v3251_v41, %v2597_v30 }
 0x334   : > { %3254 = vpow2.f32 %v2745_v19  ;;  %v2568_v51 = vsel %vm2566_vm2, %v2567_v5, %v2565_v15  ;;  %v2610_v21 = vmul.f32 %v3253_v36, %v2609_v40  ;;  %v2751_v28 = vmul.f32 1.442695, %v2732_v34 }
 0x335   : > { %3256 = vpow2.f32 %v2747_v22  ;;  %v2589_v26 = vsel %vm2588_vm6, %v4667_v63, %v2587_v4  ;;  %v2599_v20 = vmul.f32 %v2598_v6, %v4674_v52  ;;  %v2753_v55 = vmul.f32 1.442695, %v2733_v32 }
 0x336   : > { %3258 = vpow2.f32 %v2749_v59  ;;  %v2580_v41 = vsel %vm2578_vm7, %v2579_v43, %v2577_v16  ;;  %v2611_v56 = vmul.f32 %v2610_v21, %v4679_v12  ;;  %v2755_v5 = vmul.f32 1.442695, %v2734_v60 }
 0x337   : > { %3260 = vpow2.f32 %v2751_v28  ;;  %v2601_v36 = vsel %vm2600_vm8, %v4674_v52, %v2599_v20  ;;  %v2757_v44 = vmul.f32 1.442695, %v2735_v50  ;;  %v2759_v1 = vmul.f32 1.442695, %v2736_v17  ;;  %v281_v20 = vld [vmem:[%s3448_s6 + $0x70] sm:$0xff] }
 0x338   : > { %3262 = vpow2.f32 %v2753_v55  ;;  %v2592_v39 = vsel %vm2590_vm9, %v2591_v58, %v2589_v26  ;;  %v2613_v43 = vsel %vm2612_vm10, %v4679_v12, %v2611_v56  ;;  %v2777_v54 = vsub.f32 0.07, %v4694_v3  ;;  %3061 = vmatmul.msk.f32.gmra.mxu2 %vm299_vm1, %v278_v0  ;;  %3078 = vmatmul.msk.f32.gmra.mxu3 %vm299_vm1, %v278_v0  ;;  %v280_v26 = vld [vmem:[%s3448_s6 + $0x68] sm:$0xff]  ;;  %v282_v55 = vld [vmem:[%s3448_s6 + $0x78] sm:$0xff] }
 0x339   : > { %3264 = vpow2.f32 %v2755_v5  ;;  %v2604_v31 = vsel %vm2602_vm11, %v2603_v9, %v2601_v36  ;;  %v2778_v37 = vsub.f32 0.07, %v4705_v2  ;;  %v2779_v63 = vsub.f32 0.07, %v4725_v7  ;;  %v475_v9 = vpop.f32.mrf.mxu2 }
 0x33a   : > { %v3255_v18 = vpop.eup %3254  ;;  %3266 = vpow2.f32 %v2757_v44  ;;  %v2616_v42 = vsel %vm2614_vm12, %v2615_v45, %v2613_v43  ;;  %v2780_v3 = vsub.f32 0.07, %v2568_v51  ;;  %v2781_v29 = vsub.f32 0.07, %v2580_v41  ;;  %v279_v51 = vld [vmem:[%s3448_s6 + $0x60] sm:$0xff] }
 0x33b   : > { %v3257_v58 = vpop.eup %3256  ;;  %3268 = vpow2.f32 %v2759_v1  ;;  %v2782_v48 = vsub.f32 0.07, %v2592_v39  ;;  %v2793_v33 = vmul.f32 %v3255_v18, %v2777_v54  ;;  %v2783_v2 = vsub.f32 0.07, %v2604_v31 }
 0x33c   : > { %v3259_v62 = vpop.eup %3258  ;;  %v2794_v52 = vmul.f32 %v3257_v58, %v2778_v37  ;;  %v2784_v23 = vsub.f32 0.07, %v2616_v42 }
 0x33d   : > { %v3261_v34 = vpop.eup %3260  ;;  %v2795_v32 = vmul.f32 %v3259_v62, %v2779_v63  ;;  %v2809_v27 = vadd.f32 %v2793_v33, %v4634_v25 }
 0x33e   : > { %v3263_v7 = vpop.eup %3262  ;;  %v2796_v49 = vmul.f32 %v3261_v34, %v2780_v3  ;;  %v2810_v12 = vadd.f32 %v2794_v52, %v4637_v8 }
 0x33f   : > { %v3265_v45 = vpop.eup %3264  ;;  %v2797_v60 = vmul.f32 %v3263_v7, %v2781_v29  ;;  %v2811_v10 = vadd.f32 %v2795_v32, %v4640_v35  ;;  %v2841_v47 = vsel %vm630_vm13, %v2809_v27, 0.0 }
 0x340   : > { %v3267_v11 = vpop.eup %3266  ;;  %v2798_v50 = vmul.f32 %v3265_v45, %v2782_v48  ;;  %v2812_v19 = vadd.f32 %v2796_v49, %v4647_v53  ;;  %v2842_v14 = vsel %vm630_vm13, %v2810_v12, 0.0  ;;  %3062 = vmatmul.msk.f32.gmra.mxu2 %vm299_vm1, %v279_v51  ;;  %3079 = vmatmul.msk.f32.gmra.mxu3 %vm299_vm1, %v279_v51 }
 0x341   : > { %v3269_v25 = vpop.eup %3268  ;;  %v2799_v30 = vmul.f32 %v3267_v11, %v2783_v2  ;;  %v2813_v8 = vadd.f32 %v2797_v60, %v4653_v24  ;;  %v2843_v22 = vadd.f32 %v2842_v14, %v2841_v47  ;;  %v2844_v35 = vsel %vm630_vm13, %v2811_v10, 0.0 }
 0x342   : > { %v2800_v15 = vmul.f32 %v3269_v25, %v2784_v23  ;;  %v2814_v40 = vadd.f32 %v2798_v50, %v4659_v61  ;;  %v2846_v53 = vsel %vm630_vm13, %v2812_v19, 0.0 }
 0x343   : > { %v2815_v17 = vadd.f32 %v2799_v30, %v4663_v46  ;;  %v2845_v59 = vadd.f32 %v2844_v35, %v2843_v22  ;;  %v2848_v4 = vsel %vm630_vm13, %v2813_v8, 0.0 }
 0x344   : > { %v2816_v16 = vadd.f32 %v2800_v15, %v4670_v38  ;;  %v2850_v24 = vsel %vm630_vm13, %v2814_v40, 0.0 }
 0x345   : > { %v2847_v6 = vadd.f32 %v2846_v53, %v2845_v59  ;;  %v2852_v28 = vsel %vm630_vm13, %v2815_v17, 0.0  ;;  %v663_v41 = vpop.xlane.xlu0 %662 }
 0x346   : > { %v2854_v46 = vsel %vm630_vm13, %v2816_v16, 0.0  ;;  %v664_v56 = vrot.slane %v663_v41, 4 }
 0x347   : > { %v2849_v21 = vadd.f32 %v2848_v4, %v2847_v6 }
 0x348   : > { %3063 = vmatmul.msk.f32.gmra.mxu2 %vm299_vm1, %v280_v26  ;;  %3080 = vmatmul.msk.f32.gmra.mxu3 %vm299_vm1, %v280_v26  ;;  %v665_v5 = vadd.f32 %v664_v56, %v663_v41 }
 0x349   : > { %v2851_v61 = vadd.f32 %v2850_v24, %v2849_v21 }
 0x34a   : > { %v666_v36 = vrot.slane %v665_v5, 2 }
 0x34b   : > { %v2853_v13 = vadd.f32 %v2852_v28, %v2851_v61 }
 0x34c   : > { %v667_v44 = vadd.f32 %v666_v36, %v665_v5 }
 0x34d   : > { %v2855_v38 = vadd.f32 %v2854_v46, %v2853_v13 }
 0x34e   : > { %v668_v1 = vrot.slane %v667_v44, 1 }
 0x34f   : > { %2872 = vadd.xlane.f32.xlu1 %v2855_v38 }
 0x350   : > { %3064 = vmatmul.msk.f32.gmra.mxu2 %vm299_vm1, %v281_v20  ;;  %3081 = vmatmul.msk.f32.gmra.mxu3 %vm299_vm1, %v281_v20  ;;  %v669_v39 = vadd.f32 %v668_v1, %v667_v44 }
 0x352   : > { %3092 = vpush %v669_v39 }
 0x358   : > { %3065 = vmatmul.msk.f32.gmra.mxu2 %vm299_vm1, %v282_v55  ;;  %3082 = vmatmul.msk.f32.gmra.mxu3 %vm299_vm1, %v282_v55 }
 0x383   : > { %s3093_s5 = spop %3092 }
 0x384   : > { %s2882_s6 = smul.f32 0.0052083335, %s3093_s5 }
 0x386   : > { %v2884_v0 = vstv %s2882_s6 }
 0x387   : > { %2885 = vst [vmem:[%s220_s28] sm:$0xff] %v2884_v0 }
 0x3a5   : > { %v478_v43 = vpop.f32.mrf.mxu2  ;;  %v721_v54 = vpop.f32.mrf.mxu3 }
 0x3b3   : > { %v481_v18 = vpop.f32.mrf.mxu2  ;;  %v724_v31 = vpop.f32.mrf.mxu3 }
 0x3bb   : > { %v484_v58 = vpop.f32.mrf.mxu2  ;;  %v727_v42 = vpop.f32.mrf.mxu3 }
 0x3c2   : > { %v2873_v37 = vpop.xlane.xlu1 %2872 }
 0x3c3   : > { %v2874_v63 = vrot.slane %v2873_v37, 4  ;;  %v487_v33 = vpop.f32.mrf.mxu2  ;;  %v730_v52 = vpop.f32.mrf.mxu3 }
 0x3c5   : > { %v2875_v3 = vadd.f32 %v2874_v63, %v2873_v37 }
 0x3c7   : > { %v2876_v29 = vrot.slane %v2875_v3, 2 }
 0x3c9   : > { %v2877_v62 = vadd.f32 %v2876_v29, %v2875_v3 }
 0x3cb   : > { %v2878_v48 = vrot.slane %v2877_v62, 1  ;;  %v490_v57 = vpop.f32.mrf.mxu2  ;;  %v733_v34 = vpop.f32.mrf.mxu3 }
 0x3cd   : > { %v2879_v9 = vadd.f32 %v2878_v48, %v2877_v62 }
 0x3cf   : > { %3094 = vpush %v2879_v9 }
 0x3d3   : > { %v493_v2 = vpop.f32.mrf.mxu2  ;;  %v736_v32 = vpop.f32.mrf.mxu3 }
 0x3db   : > { %v496_v7 = vpop.f32.mrf.mxu2  ;;  %v739_v23 = vpop.f32.mrf.mxu3 }
 0x3dc   : > { %3297 = shalt.err (!%p3294_p3)
}
 0x3dd   : > { %3096 = dma.vmem_to_hbm [thread:$0]  (%p3429_p5), %s2907_s29, 128, %s2909_s30, %s2889_s7  }
 0x3de   : > { %s2918_s5 = scalar_lea.hbm %s4883_s4, %s3085_s14  ;;  %s227_s6 = scalar_lea.vmem [#allocation6], %s3043_s20 }
 0x3df   : > { %s2920_s10 = sshll.u32 %s227_s6, 4  ;;  %s2922_s8 = sshll.u32 %s2918_s5, 4  ;;  %s2921_s10 = int_to_ptr.vmem [resolvable:$true] %s2920_s10  ;;  %s2923_s8 = int_to_ptr.hbm [resolvable:$true] %s2922_s8 }
 0x3e0   : > { %s2894_s12 = scalar_lea.sflag [#allocation7], %s4822_s13  ;;  %s3312_s22 = sshra.s32 %s2923_s8, 4  ;;  %s3313_s22 = int_to_ptr.hbm [resolvable:$true] %s3312_s22 }
 0x3e1   : > { %s3314_s29 = scalar_lea.hbm %s3313_s22, 8  ;;  %s3318_s20 = scalar_lea.hbm %s4883_s4, 16 }
 0x3e2   : > { %p3315_p4 = scmp.ne.s32.totalorder %s3313_s22, %s3314_s29  ;;  %p3319_p9 = scmp.lt.s32.totalorder %s3313_s22, %s4883_s4 }
 0x3e3   : > { %p3320_p10 = scmp.lt.s32.totalorder %s3318_s20, %s3314_s29 }
 0x3e4   : > { %p3316_p7 = pnand %p3315_p4, %p3429_p5 }
 0x3e5   : > { %p3321_p11 = por %p3320_p10, %p3319_p9 }
 0x3e6   : > { %p3317_p8 = pneg %p3316_p7 }
 0x3e8   : > { %p3322_p12 = pnand %p3321_p11, %p3317_p8 }
 0x400   : > { %s3095_s9 = spop %3094 }
 0x401   : > { %s2883_s11 = smul.f32 0.00390625, %s3095_s9 }
 0x403   : > { %v2886_v49 = vstv %s2883_s11 }
 0x404   : > { %2887 = vst [vmem:[%s227_s6] sm:$0xff] %v2886_v49 }
 0x405   : > { %3325 = shalt.err (!%p3322_p12)
}
 0x406   : > { %3097 = dma.vmem_to_hbm [thread:$0]  (%p3429_p5), %s2921_s10, 128, %s2923_s8, %s2894_s12  }
 0x407 PF: > { %p3107_p13 = scmp.ge.s32.totalorder %s3364_s18, 2  ;;  %s2934_s13 = sand.u32 1, %s3352_s15  }
 0x408   : > { %s2935_s23 = scalar_lea.sflag [#allocation5], %s2934_s13 }
 0x409   : > { %p3101_p0 = pnand %p3107_p13, %p3433_p6 }
 0x40b   : > { %p3102_p1 = pneg %p3101_p0 }
 0x40d   : > { %3343 = dma.done.wait (%p3102_p1), %s2935_s23, 128  }
 0x40e   : > { %3345 = vsyncadd (%p3102_p1), %s2935_s23, 4294967168  ;;  %s2945_s27 = scalar_lea.sflag [#allocation7], %s2934_s13 }
 0x40f   : > { %3347 = dma.done.wait (%p3102_p1), %s2945_s27, 128  }
 0x410   : > { %3349 = vsyncadd (%p3102_p1), %s2945_s27, 4294967168  ;;  %p18_p5 = scmp.ge.s32.totalorder %s3416_s21, 4   ;;  %s4955_s15 = smov %s3356_s16 }
 0x411   : > { %s4956_s16 = smov %s3360_s17  ;;  %s4957_s17 = smov %s3427_s24 }
 0x412   : > { %s4958_s18 = smov %s3416_s21  ;;  %20 = sbr.rel (!%p18_p5) target bundleno = 5 (0x5), region = 90 }
 0x417   :  { %2951 = vsyncpa [#allocation5], 1 }
 0x418   :  { %2953 = vsyncpa [#allocation5 + $0x1], 1 }
 0x419   :  { %2954 = vsyncpa [#allocation7], 1 }
 0x41a   :  { %2956 = vsyncpa [#allocation7 + $0x1], 1 }

</bundles_post_ra>
